<compile_context>
chip_gen: v7x
topology: tpu7x:2x2x1
jax: 0.10.0
libtpu: 0.0.40
codegen_flags: <defaults>
</compile_context>

<pallas_src>
import math

import jax
import jax.numpy as jnp
from jax.experimental import pallas as pl
from jax.experimental.pallas import tpu as pltpu

# ---- small ViT config (consistent with a ViT forward, scaled down) ----------
IMG = 16                              # input spatial size
PATCH = 8                             # patch size -> 2x2 = 4 patches
C_IN = 3                              # RGB
HIDDEN = 32                           # embedding dim
NUM_HEADS = 4                         # head_dim = 8
HEAD_DIM = HIDDEN // NUM_HEADS
MLP_DIM = 64
NUM_LAYERS = 2
NUM_CLASSES = 38                      # the replaced head: nn.Linear(in_features, 38)
PAD_CLASSES = 128                     # lane-dense output slab (sliced to 38 in glue)
LN_EPS = 1e-6                         # torchvision ViT LayerNorm eps
N_PATCH = (IMG // PATCH) ** 2         # 4
SEQ = N_PATCH + 1                     # 5  (class token + patches)
PATCH_DIM = C_IN * PATCH * PATCH      # 192
SLAB_LANES = 128                      # packed weight slab width (lane-dense)


def _round_up(x, m):
    return (x + m - 1) // m * m


# --------------------- packed weight-slab layout (static) --------------------
# All weights live in one (rows, 128) f32 slab; each entry is 8-row aligned so
# in-kernel static slices stay sublane-aligned.  "x @ W" layouts throughout.
def _make_slab_layout():
    layout = []
    off = 0

    def add(name, rows, cols):
        nonlocal off
        layout.append((name, off, rows, cols))
        off += _round_up(rows, 8)

    add("patch_wt", PATCH_DIM, HIDDEN)          # conv_proj flattened, transposed
    add("cls_row", 1, HIDDEN)                   # cls_token + pos_emb[0]
    add("patch_pos_bias", N_PATCH, HIDDEN)      # conv_proj bias + pos_emb[1:]
    for l in range(NUM_LAYERS):
        add(f"ln1_w_{l}", 1, HIDDEN)
        add(f"ln1_b_{l}", 1, HIDDEN)
        add(f"wqkv_t_{l}", HIDDEN, 3 * HIDDEN)  # Q columns pre-scaled
        add(f"bqkv_{l}", 1, 3 * HIDDEN)
        add(f"wo_t_{l}", HIDDEN, HIDDEN)
        add(f"bo_{l}", 1, HIDDEN)
        add(f"ln2_w_{l}", 1, HIDDEN)
        add(f"ln2_b_{l}", 1, HIDDEN)
        add(f"w1_t_{l}", HIDDEN, MLP_DIM)
        add(f"b1_{l}", 1, MLP_DIM)
        add(f"w2_t_{l}", MLP_DIM, HIDDEN)
        add(f"b2_{l}", 1, HIDDEN)
    add("ln_f_w", 1, HIDDEN)
    add("ln_f_b", 1, HIDDEN)
    add("head_wt", HIDDEN, PAD_CLASSES)         # replaced nn.Linear(H, 38), padded
    add("head_b", 1, PAD_CLASSES)
    return tuple(layout), off


_SLAB_LAYOUT, _SLAB_ROWS = _make_slab_layout()
_SLAB_INDEX = {name: (off, rows, cols) for name, off, rows, cols in _SLAB_LAYOUT}


# =============================== fused kernel ================================

def _fused_vit_kernel(patches_ref, w_ref, o_ref):
    def w(name):
        off, rows, cols = _SLAB_INDEX[name]
        return w_ref[off:off + rows, :cols]          # static, 8-row-aligned slice

    def ln(z, gamma, beta):
        mu = jnp.mean(z, axis=-1, keepdims=True)
        zc = z - mu
        var = jnp.mean(zc * zc, axis=-1, keepdims=True)
        return zc * jax.lax.rsqrt(var + LN_EPS) * gamma + beta

    nb = patches_ref.shape[0] // N_PATCH             # batch (folded into the block)
    nt = nb * SEQ                                    # total tokens across the batch

    # --- patch projection for the whole batch in one matmul ------------------
    tokens = jnp.dot(patches_ref[...], w("patch_wt"),
                     preferred_element_type=jnp.float32)          # (nb*N_PATCH, H)
    cls_row = w("cls_row")                                        # cls_tok + pos[0]
    patch_pos = w("patch_pos_bias")                               # bias + pos[1:]
    pieces = []
    for b in range(nb):
        pieces.append(cls_row)
        pieces.append(tokens[b * N_PATCH:(b + 1) * N_PATCH, :] + patch_pos)
    x = jnp.concatenate(pieces, axis=0)                           # (nt, H)

    # --- block-diagonal (per-sample) attention mask, built once on the VPU ---
    r = jax.lax.broadcasted_iota(jnp.int32, (nt, nt), 0)
    c = jax.lax.broadcasted_iota(jnp.int32, (nt, nt), 1)
    same = None
    for b in range(nb):
        lo, hi = b * SEQ, (b + 1) * SEQ
        blk = (r >= lo) & (r < hi) & (c >= lo) & (c < hi)
        same = blk if same is None else (same | blk)
    mask = same.astype(jnp.float32)                               # (nt, nt)

    # --- encoder blocks (statically unrolled) ---------------------------------
    for l in range(NUM_LAYERS):
        y = ln(x, w(f"ln1_w_{l}"), w(f"ln1_b_{l}"))
        qkv = jnp.dot(y, w(f"wqkv_t_{l}"),
                      preferred_element_type=jnp.float32) + w(f"bqkv_{l}")    # (nt, 3H)
        # 1/sqrt(head_dim) already folded into the Q columns at init time.
        q = qkv[:, 0 * HIDDEN:1 * HIDDEN]
        k = qkv[:, 1 * HIDDEN:2 * HIDDEN]
        v = qkv[:, 2 * HIDDEN:3 * HIDDEN]

        heads = []
        for h in range(NUM_HEADS):                   # static unroll over heads
            sl = slice(h * HEAD_DIM, (h + 1) * HEAD_DIM)
            # Both samples' scores in ONE matmul; transposed-RHS contraction
            # (no explicit .T / XLU relayout of the tiny K tile).
            s = jax.lax.dot_general(q[:, sl], k[:, sl],
                                    (((1,), (1,)), ((), ())),
                                    preferred_element_type=jnp.float32)       # (nt, nt)
            # No max-subtraction: activations are O(1) f32 at SEQ=5 so exp cannot
            # overflow; cross-sample entries are zeroed by the block-diag mask.
            p = jnp.exp(s) * mask
            denom = jnp.sum(p, axis=-1, keepdims=True)
            p = p * pl.reciprocal(denom, approx=True)
            heads.append(jnp.dot(p, v[:, sl],
                                 preferred_element_type=jnp.float32))         # (nt, dh)
        # single full-width out-projection on the concatenated heads
        attn = jnp.concatenate(heads, axis=-1)                                # (nt, H)
        x = x + jnp.dot(attn, w(f"wo_t_{l}"),
                        preferred_element_type=jnp.float32) + w(f"bo_{l}")

        # MLP sub-block
        z = ln(x, w(f"ln2_w_{l}"), w(f"ln2_b_{l}"))
        h1 = jnp.dot(z, w(f"w1_t_{l}"),
                     preferred_element_type=jnp.float32) + w(f"b1_{l}")
        # TODO(synk): torch.nn.GELU defaults to exact erf GELU; tanh approximation used here.
        h1 = jax.nn.gelu(h1, approximate=True)
        x = x + jnp.dot(h1, w(f"w2_t_{l}"),
                        preferred_element_type=jnp.float32) + w(f"b2_{l}")

    # --- final LayerNorm on the class-token rows only, then the replaced head
    cls = jnp.concatenate([x[b * SEQ:b * SEQ + 1, :] for b in range(nb)], axis=0)  # (nb, H)
    yc = ln(cls, w("ln_f_w"), w("ln_f_b"))
    o_ref[...] = jnp.dot(yc, w("head_wt"),
                         preferred_element_type=jnp.float32) + w("head_b")    # (nb, 128)


# ============================ forward (wrapper) ===============================

def vit_forward(x_nchw, params):
    B = x_nchw.shape[0]
    g = IMG // PATCH

    # conv_proj (stride == kernel) as patch-flatten (order: c, ph, pw) — glue only.
    # If real torchvision conv_proj weights were loaded, this order must match
    # conv_weight.reshape(hidden, -1); it holds by construction for synthetic init.
    patches = x_nchw.reshape(B, C_IN, g, PATCH, g, PATCH)
    patches = patches.transpose(0, 2, 4, 1, 3, 5).reshape(B * N_PATCH, PATCH_DIM)

    slab = params["slab"]

    logits_pad = pl.pallas_call(
        _fused_vit_kernel,
        out_shape=jax.ShapeDtypeStruct((B, PAD_CLASSES), jnp.float32),
        grid=(1,),                                     # batch folded into one block
        in_specs=[
            pl.BlockSpec((B * N_PATCH, PATCH_DIM), lambda i: (0, 0)),
            pl.BlockSpec(slab.shape, lambda i: (0, 0)),  # one weight slab = one DMA
        ],
        out_specs=pl.BlockSpec((B, PAD_CLASSES), lambda i: (0, 0)),
    )(patches, slab)

    return logits_pad[:, :NUM_CLASSES]


# ============================ deterministic init ==============================

def init_params(key):
    keys = jax.random.split(key, 8 + NUM_LAYERS)

    def norm(k, shape, scale=0.02):
        return (scale * jax.random.normal(k, shape)).astype(jnp.float32)

    # torch-layout weights, transposed / pre-folded ONCE here (not per forward)
    patch_w = norm(keys[0], (HIDDEN, PATCH_DIM))       # conv_proj, flattened
    patch_b = norm(keys[1], (1, HIDDEN))
    cls_tok = norm(keys[2], (1, HIDDEN))
    pos_emb = norm(keys[3], (SEQ, HIDDEN))
    head_w = norm(keys[4], (NUM_CLASSES, HIDDEN))      # replaced nn.Linear(H, 38)
    head_b = norm(keys[5], (1, NUM_CLASSES))

    ones = jnp.ones((1, HIDDEN), jnp.float32)
    zeros = jnp.zeros((1, HIDDEN), jnp.float32)
    scale = 1.0 / math.sqrt(HEAD_DIM)

    wdict = {
        "patch_wt": patch_w.T,                          # (192, 32)
        "cls_row": cls_tok + pos_emb[0:1],              # (1, 32)
        "patch_pos_bias": patch_b + pos_emb[1:],        # (4, 32)
    }
    for l in range(NUM_LAYERS):
        lk = jax.random.split(keys[8 + l], 8)
        wqkv = norm(lk[0], (3 * HIDDEN, HIDDEN))        # MHA in_proj_weight
        bqkv = norm(lk[1], (1, 3 * HIDDEN))
        wo = norm(lk[2], (HIDDEN, HIDDEN))              # MHA out_proj
        bo = norm(lk[3], (1, HIDDEN))
        w1 = norm(lk[4], (MLP_DIM, HIDDEN))             # MLP linear_1
        b1 = norm(lk[5], (1, MLP_DIM))
        w2 = norm(lk[6], (HIDDEN, MLP_DIM))             # MLP linear_2
        b2 = norm(lk[7], (1, HIDDEN))
        # fold 1/sqrt(head_dim) into the Q rows / Q bias (paid once at init)
        wqkv = wqkv.at[:HIDDEN, :].multiply(scale)
        bqkv = bqkv.at[:, :HIDDEN].multiply(scale)
        wdict.update({
            f"ln1_w_{l}": ones, f"ln1_b_{l}": zeros,
            f"wqkv_t_{l}": wqkv.T, f"bqkv_{l}": bqkv,
            f"wo_t_{l}": wo.T, f"bo_{l}": bo,
            f"ln2_w_{l}": ones, f"ln2_b_{l}": zeros,
            f"w1_t_{l}": w1.T, f"b1_{l}": b1,
            f"w2_t_{l}": w2.T, f"b2_{l}": b2,
        })
    head_wt_pad = jnp.zeros((HIDDEN, PAD_CLASSES), jnp.float32)
    head_wt_pad = head_wt_pad.at[:, :NUM_CLASSES].set(head_w.T)
    head_b_pad = jnp.zeros((1, PAD_CLASSES), jnp.float32)
    head_b_pad = head_b_pad.at[:, :NUM_CLASSES].set(head_b)
    wdict.update({"ln_f_w": ones, "ln_f_b": zeros,
                  "head_wt": head_wt_pad, "head_b": head_b_pad})

    # pack everything into one lane-dense (rows, 128) slab
    slab = jnp.zeros((_SLAB_ROWS, SLAB_LANES), jnp.float32)
    for name, off, rows, cols in _SLAB_LAYOUT:
        slab = slab.at[off:off + rows, :cols].set(wdict[name])
    return {"slab": jax.device_put(slab)}


# =================================== main =====================================

if __name__ == "__main__":
    key = jax.random.PRNGKey(0)
    pkey, xkey = jax.random.split(key)
    params = init_params(pkey)

    x = jax.random.normal(xkey, (2, C_IN, IMG, IMG), dtype=jnp.float32)  # NCHW

    fwd = jax.jit(vit_forward)
    logits = jax.block_until_ready(fwd(x, params))

    assert logits.shape == (2, NUM_CLASSES), logits.shape
    assert bool(jnp.all(jnp.isfinite(logits)))
    print("KERNEL_OK")
</pallas_src>

<mosaic_0001>
module attributes {stable_mosaic.version = 11 : i64} {
  func.func @_fused_vit_kernel(%arg0: i32, %arg1: memref<8x192xf32, #tpu.memory_space<vmem>>, %arg2: memref<712x128xf32, #tpu.memory_space<vmem>>, %arg3: memref<2x128xf32, #tpu.memory_space<vmem>>) attributes {dimension_semantics = [#tpu.dimension_semantics<arbitrary>], iteration_bounds = array<i64: 1>, scalar_prefetch = 0 : i64, scratch_operands = 0 : i64, tpu.core_type = #tpu.core_type<tc>, window_params = [{pipeline_mode = #tpu.pipeline_mode<synchronous>, transform_indices = @transform_0, window_bounds = array<i64: 8, 192>}, {pipeline_mode = #tpu.pipeline_mode<synchronous>, transform_indices = @transform_1, window_bounds = array<i64: 712, 128>}, {pipeline_mode = #tpu.pipeline_mode<synchronous>, transform_indices = @transform_2, window_bounds = array<i64: 2, 128>}]} {
    %c0 = arith.constant 0 : index
    %c0_0 = arith.constant 0 : index
    %0 = vector.load %arg1[%c0, %c0_0] : memref<8x192xf32, #tpu.memory_space<vmem>>, vector<8x192xf32>
    %c0_1 = arith.constant 0 : index
    %c0_2 = arith.constant 0 : index
    %1 = vector.load %arg2[%c0_1, %c0_2] : memref<712x128xf32, #tpu.memory_space<vmem>>, vector<192x32xf32>
    %cst = arith.constant dense<0.000000e+00> : vector<8x32xf32>
    %2 = tpu.matmul %0, %1, %cst {dimension_numbers = #tpu.dot_dimension_numbers<[1], [0], [0], [1], [0, 0, 1, 1], [], []>} : vector<8x192xf32>, vector<192x32xf32>, vector<8x32xf32> -> vector<8x32xf32>
    %c192 = arith.constant 192 : index
    %c0_3 = arith.constant 0 : index
    %3 = vector.load %arg2[%c192, %c0_3] : memref<712x128xf32, #tpu.memory_space<vmem>>, vector<1x32xf32>
    %c200 = arith.constant 200 : index
    %c0_4 = arith.constant 0 : index
    %4 = vector.load %arg2[%c200, %c0_4] : memref<712x128xf32, #tpu.memory_space<vmem>>, vector<4x32xf32>
    %5 = vector.extract_strided_slice %2 {offsets = [0, 0], sizes = [4, 32], strides = [1, 1]} : vector<8x32xf32> to vector<4x32xf32>
    %6 = arith.addf %5, %4 : vector<4x32xf32>
    %7 = vector.extract_strided_slice %2 {offsets = [4, 0], sizes = [4, 32], strides = [1, 1]} : vector<8x32xf32> to vector<4x32xf32>
    %8 = arith.addf %7, %4 : vector<4x32xf32>
    %9 = tpu.concatenate %3, %6, %3, %8 in 0 : vector<1x32xf32>, vector<4x32xf32>, vector<1x32xf32>, vector<4x32xf32> -> vector<10x32xf32>
    %10 = tpu.iota {dimensions = array<i32: 0>} : vector<10x10xi32>
    %11 = tpu.iota {dimensions = array<i32: 1>} : vector<10x10xi32>
    %c0_i32 = arith.constant 0 : i32
    %12 = vector.broadcast %c0_i32 : i32 to vector<10x10xi32>
    %13 = arith.cmpi sge, %10, %12 : vector<10x10xi32>
    %c5_i32 = arith.constant 5 : i32
    %14 = vector.broadcast %c5_i32 : i32 to vector<10x10xi32>
    %15 = arith.cmpi slt, %10, %14 : vector<10x10xi32>
    %16 = arith.andi %13, %15 : vector<10x10xi1>
    %c0_i32_5 = arith.constant 0 : i32
    %17 = vector.broadcast %c0_i32_5 : i32 to vector<10x10xi32>
    %18 = arith.cmpi sge, %11, %17 : vector<10x10xi32>
    %19 = arith.andi %16, %18 : vector<10x10xi1>
    %c5_i32_6 = arith.constant 5 : i32
    %20 = vector.broadcast %c5_i32_6 : i32 to vector<10x10xi32>
    %21 = arith.cmpi slt, %11, %20 : vector<10x10xi32>
    %22 = arith.andi %19, %21 : vector<10x10xi1>
    %c5_i32_7 = arith.constant 5 : i32
    %23 = vector.broadcast %c5_i32_7 : i32 to vector<10x10xi32>
    %24 = arith.cmpi sge, %10, %23 : vector<10x10xi32>
    %c10_i32 = arith.constant 10 : i32
    %25 = vector.broadcast %c10_i32 : i32 to vector<10x10xi32>
    %26 = arith.cmpi slt, %10, %25 : vector<10x10xi32>
    %27 = arith.andi %24, %26 : vector<10x10xi1>
    %c5_i32_8 = arith.constant 5 : i32
    %28 = vector.broadcast %c5_i32_8 : i32 to vector<10x10xi32>
    %29 = arith.cmpi sge, %11, %28 : vector<10x10xi32>
    %30 = arith.andi %27, %29 : vector<10x10xi1>
    %c10_i32_9 = arith.constant 10 : i32
    %31 = vector.broadcast %c10_i32_9 : i32 to vector<10x10xi32>
    %32 = arith.cmpi slt, %11, %31 : vector<10x10xi32>
    %33 = arith.andi %30, %32 : vector<10x10xi1>
    %34 = arith.ori %22, %33 : vector<10x10xi1>
    %35 = arith.extui %34 : vector<10x10xi1> to vector<10x10xi32>
    %36 = arith.sitofp %35 : vector<10x10xi32> to vector<10x10xf32>
    %c208 = arith.constant 208 : index
    %c0_10 = arith.constant 0 : index
    %37 = vector.load %arg2[%c208, %c0_10] : memref<712x128xf32, #tpu.memory_space<vmem>>, vector<1x32xf32>
    %c216 = arith.constant 216 : index
    %c0_11 = arith.constant 0 : index
    %38 = vector.load %arg2[%c216, %c0_11] : memref<712x128xf32, #tpu.memory_space<vmem>>, vector<1x32xf32>
    %cst_12 = arith.constant dense<0.000000e+00> : vector<10xf32>
    %39 = vector.multi_reduction <add>, %9, %cst_12 [1] : vector<10x32xf32> to vector<10xf32>
    %40 = vector.shape_cast %39 : vector<10xf32> to vector<10x1xf32>
    %cst_13 = arith.constant 3.200000e+01 : f32
    %41 = vector.broadcast %cst_13 : f32 to vector<10x1xf32>
    %42 = arith.divf %40, %41 : vector<10x1xf32>
    %43 = vector.broadcast %42 : vector<10x1xf32> to vector<10x32xf32>
    %44 = arith.subf %9, %43 : vector<10x32xf32>
    %45 = arith.mulf %44, %44 : vector<10x32xf32>
    %cst_14 = arith.constant dense<0.000000e+00> : vector<10xf32>
    %46 = vector.multi_reduction <add>, %45, %cst_14 [1] : vector<10x32xf32> to vector<10xf32>
    %47 = vector.shape_cast %46 : vector<10xf32> to vector<10x1xf32>
    %cst_15 = arith.constant 3.200000e+01 : f32
    %48 = vector.broadcast %cst_15 : f32 to vector<10x1xf32>
    %49 = arith.divf %47, %48 : vector<10x1xf32>
    %cst_16 = arith.constant 9.99999997E-7 : f32
    %50 = vector.broadcast %cst_16 : f32 to vector<10x1xf32>
    %51 = arith.addf %49, %50 : vector<10x1xf32>
    %52 = math.rsqrt %51 : vector<10x1xf32>
    %53 = vector.broadcast %52 : vector<10x1xf32> to vector<10x32xf32>
    %54 = arith.mulf %44, %53 : vector<10x32xf32>
    %55 = vector.broadcast %37 : vector<1x32xf32> to vector<10x32xf32>
    %56 = arith.mulf %54, %55 : vector<10x32xf32>
    %57 = vector.broadcast %38 : vector<1x32xf32> to vector<10x32xf32>
    %58 = arith.addf %56, %57 : vector<10x32xf32>
    %c224 = arith.constant 224 : index
    %c0_17 = arith.constant 0 : index
    %59 = vector.load %arg2[%c224, %c0_17] : memref<712x128xf32, #tpu.memory_space<vmem>>, vector<32x96xf32>
    %cst_18 = arith.constant dense<0.000000e+00> : vector<10x96xf32>
    %60 = tpu.matmul %58, %59, %cst_18 {dimension_numbers = #tpu.dot_dimension_numbers<[1], [0], [0], [1], [0, 0, 1, 1], [], []>} : vector<10x32xf32>, vector<32x96xf32>, vector<10x96xf32> -> vector<10x96xf32>
    %c256 = arith.constant 256 : index
    %c0_19 = arith.constant 0 : index
    %61 = vector.load %arg2[%c256, %c0_19] : memref<712x128xf32, #tpu.memory_space<vmem>>, vector<1x96xf32>
    %62 = vector.broadcast %61 : vector<1x96xf32> to vector<10x96xf32>
    %63 = arith.addf %60, %62 : vector<10x96xf32>
    %64 = vector.extract_strided_slice %63 {offsets = [0, 0], sizes = [10, 32], strides = [1, 1]} : vector<10x96xf32> to vector<10x32xf32>
    %65 = vector.extract_strided_slice %63 {offsets = [0, 32], sizes = [10, 32], strides = [1, 1]} : vector<10x96xf32> to vector<10x32xf32>
    %66 = vector.extract_strided_slice %63 {offsets = [0, 64], sizes = [10, 32], strides = [1, 1]} : vector<10x96xf32> to vector<10x32xf32>
    %67 = vector.extract_strided_slice %64 {offsets = [0, 0], sizes = [10, 8], strides = [1, 1]} : vector<10x32xf32> to vector<10x8xf32>
    %68 = vector.extract_strided_slice %65 {offsets = [0, 0], sizes = [10, 8], strides = [1, 1]} : vector<10x32xf32> to vector<10x8xf32>
    %cst_20 = arith.constant dense<0.000000e+00> : vector<10x10xf32>
    %69 = tpu.matmul %67, %68, %cst_20 {dimension_numbers = #tpu.dot_dimension_numbers<[1], [1], [0], [0], [0, 0, 1, 0], [], []>} : vector<10x8xf32>, vector<10x8xf32>, vector<10x10xf32> -> vector<10x10xf32>
    %70 = math.exp %69 : vector<10x10xf32>
    %71 = arith.mulf %70, %36 : vector<10x10xf32>
    %cst_21 = arith.constant dense<0.000000e+00> : vector<10xf32>
    %72 = vector.multi_reduction <add>, %71, %cst_21 [1] : vector<10x10xf32> to vector<10xf32>
    %73 = vector.shape_cast %72 : vector<10xf32> to vector<10x1xf32>
    %74 = tpu.reciprocal %73 {approx = true} : vector<10x1xf32> -> vector<10x1xf32>
    %75 = vector.broadcast %74 : vector<10x1xf32> to vector<10x10xf32>
    %76 = arith.mulf %71, %75 : vector<10x10xf32>
    %77 = vector.extract_strided_slice %66 {offsets = [0, 0], sizes = [10, 8], strides = [1, 1]} : vector<10x32xf32> to vector<10x8xf32>
    %cst_22 = arith.constant dense<0.000000e+00> : vector<10x8xf32>
    %78 = tpu.matmul %76, %77, %cst_22 {dimension_numbers = #tpu.dot_dimension_numbers<[1], [0], [0], [1], [0, 0, 1, 1], [], []>} : vector<10x10xf32>, vector<10x8xf32>, vector<10x8xf32> -> vector<10x8xf32>
    %79 = vector.extract_strided_slice %64 {offsets = [0, 8], sizes = [10, 8], strides = [1, 1]} : vector<10x32xf32> to vector<10x8xf32>
    %80 = vector.extract_strided_slice %65 {offsets = [0, 8], sizes = [10, 8], strides = [1, 1]} : vector<10x32xf32> to vector<10x8xf32>
    %cst_23 = arith.constant dense<0.000000e+00> : vector<10x10xf32>
    %81 = tpu.matmul %79, %80, %cst_23 {dimension_numbers = #tpu.dot_dimension_numbers<[1], [1], [0], [0], [0, 0, 1, 0], [], []>} : vector<10x8xf32>, vector<10x8xf32>, vector<10x10xf32> -> vector<10x10xf32>
    %82 = math.exp %81 : vector<10x10xf32>
    %83 = arith.mulf %82, %36 : vector<10x10xf32>
    %cst_24 = arith.constant dense<0.000000e+00> : vector<10xf32>
    %84 = vector.multi_reduction <add>, %83, %cst_24 [1] : vector<10x10xf32> to vector<10xf32>
    %85 = vector.shape_cast %84 : vector<10xf32> to vector<10x1xf32>
    %86 = tpu.reciprocal %85 {approx = true} : vector<10x1xf32> -> vector<10x1xf32>
    %87 = vector.broadcast %86 : vector<10x1xf32> to vector<10x10xf32>
    %88 = arith.mulf %83, %87 : vector<10x10xf32>
    %89 = vector.extract_strided_slice %66 {offsets = [0, 8], sizes = [10, 8], strides = [1, 1]} : vector<10x32xf32> to vector<10x8xf32>
    %cst_25 = arith.constant dense<0.000000e+00> : vector<10x8xf32>
    %90 = tpu.matmul %88, %89, %cst_25 {dimension_numbers = #tpu.dot_dimension_numbers<[1], [0], [0], [1], [0, 0, 1, 1], [], []>} : vector<10x10xf32>, vector<10x8xf32>, vector<10x8xf32> -> vector<10x8xf32>
    %91 = vector.extract_strided_slice %64 {offsets = [0, 16], sizes = [10, 8], strides = [1, 1]} : vector<10x32xf32> to vector<10x8xf32>
    %92 = vector.extract_strided_slice %65 {offsets = [0, 16], sizes = [10, 8], strides = [1, 1]} : vector<10x32xf32> to vector<10x8xf32>
    %cst_26 = arith.constant dense<0.000000e+00> : vector<10x10xf32>
    %93 = tpu.matmul %91, %92, %cst_26 {dimension_numbers = #tpu.dot_dimension_numbers<[1], [1], [0], [0], [0, 0, 1, 0], [], []>} : vector<10x8xf32>, vector<10x8xf32>, vector<10x10xf32> -> vector<10x10xf32>
    %94 = math.exp %93 : vector<10x10xf32>
    %95 = arith.mulf %94, %36 : vector<10x10xf32>
    %cst_27 = arith.constant dense<0.000000e+00> : vector<10xf32>
    %96 = vector.multi_reduction <add>, %95, %cst_27 [1] : vector<10x10xf32> to vector<10xf32>
    %97 = vector.shape_cast %96 : vector<10xf32> to vector<10x1xf32>
    %98 = tpu.reciprocal %97 {approx = true} : vector<10x1xf32> -> vector<10x1xf32>
    %99 = vector.broadcast %98 : vector<10x1xf32> to vector<10x10xf32>
    %100 = arith.mulf %95, %99 : vector<10x10xf32>
    %101 = vector.extract_strided_slice %66 {offsets = [0, 16], sizes = [10, 8], strides = [1, 1]} : vector<10x32xf32> to vector<10x8xf32>
    %cst_28 = arith.constant dense<0.000000e+00> : vector<10x8xf32>
    %102 = tpu.matmul %100, %101, %cst_28 {dimension_numbers = #tpu.dot_dimension_numbers<[1], [0], [0], [1], [0, 0, 1, 1], [], []>} : vector<10x10xf32>, vector<10x8xf32>, vector<10x8xf32> -> vector<10x8xf32>
    %103 = vector.extract_strided_slice %64 {offsets = [0, 24], sizes = [10, 8], strides = [1, 1]} : vector<10x32xf32> to vector<10x8xf32>
    %104 = vector.extract_strided_slice %65 {offsets = [0, 24], sizes = [10, 8], strides = [1, 1]} : vector<10x32xf32> to vector<10x8xf32>
    %cst_29 = arith.constant dense<0.000000e+00> : vector<10x10xf32>
    %105 = tpu.matmul %103, %104, %cst_29 {dimension_numbers = #tpu.dot_dimension_numbers<[1], [1], [0], [0], [0, 0, 1, 0], [], []>} : vector<10x8xf32>, vector<10x8xf32>, vector<10x10xf32> -> vector<10x10xf32>
    %106 = math.exp %105 : vector<10x10xf32>
    %107 = arith.mulf %106, %36 : vector<10x10xf32>
    %cst_30 = arith.constant dense<0.000000e+00> : vector<10xf32>
    %108 = vector.multi_reduction <add>, %107, %cst_30 [1] : vector<10x10xf32> to vector<10xf32>
    %109 = vector.shape_cast %108 : vector<10xf32> to vector<10x1xf32>
    %110 = tpu.reciprocal %109 {approx = true} : vector<10x1xf32> -> vector<10x1xf32>
    %111 = vector.broadcast %110 : vector<10x1xf32> to vector<10x10xf32>
    %112 = arith.mulf %107, %111 : vector<10x10xf32>
    %113 = vector.extract_strided_slice %66 {offsets = [0, 24], sizes = [10, 8], strides = [1, 1]} : vector<10x32xf32> to vector<10x8xf32>
    %cst_31 = arith.constant dense<0.000000e+00> : vector<10x8xf32>
    %114 = tpu.matmul %112, %113, %cst_31 {dimension_numbers = #tpu.dot_dimension_numbers<[1], [0], [0], [1], [0, 0, 1, 1], [], []>} : vector<10x10xf32>, vector<10x8xf32>, vector<10x8xf32> -> vector<10x8xf32>
    %115 = tpu.concatenate %78, %90, %102, %114 in 1 : vector<10x8xf32>, vector<10x8xf32>, vector<10x8xf32>, vector<10x8xf32> -> vector<10x32xf32>
    %c264 = arith.constant 264 : index
    %c0_32 = arith.constant 0 : index
    %116 = vector.load %arg2[%c264, %c0_32] : memref<712x128xf32, #tpu.memory_space<vmem>>, vector<32x32xf32>
    %cst_33 = arith.constant dense<0.000000e+00> : vector<10x32xf32>
    %117 = tpu.matmul %115, %116, %cst_33 {dimension_numbers = #tpu.dot_dimension_numbers<[1], [0], [0], [1], [0, 0, 1, 1], [], []>} : vector<10x32xf32>, vector<32x32xf32>, vector<10x32xf32> -> vector<10x32xf32>
    %118 = arith.addf %9, %117 : vector<10x32xf32>
    %c296 = arith.constant 296 : index
    %c0_34 = arith.constant 0 : index
    %119 = vector.load %arg2[%c296, %c0_34] : memref<712x128xf32, #tpu.memory_space<vmem>>, vector<1x32xf32>
    %120 = vector.broadcast %119 : vector<1x32xf32> to vector<10x32xf32>
    %121 = arith.addf %118, %120 : vector<10x32xf32>
    %c304 = arith.constant 304 : index
    %c0_35 = arith.constant 0 : index
    %122 = vector.load %arg2[%c304, %c0_35] : memref<712x128xf32, #tpu.memory_space<vmem>>, vector<1x32xf32>
    %c312 = arith.constant 312 : index
    %c0_36 = arith.constant 0 : index
    %123 = vector.load %arg2[%c312, %c0_36] : memref<712x128xf32, #tpu.memory_space<vmem>>, vector<1x32xf32>
    %cst_37 = arith.constant dense<0.000000e+00> : vector<10xf32>
    %124 = vector.multi_reduction <add>, %121, %cst_37 [1] : vector<10x32xf32> to vector<10xf32>
    %125 = vector.shape_cast %124 : vector<10xf32> to vector<10x1xf32>
    %cst_38 = arith.constant 3.200000e+01 : f32
    %126 = vector.broadcast %cst_38 : f32 to vector<10x1xf32>
    %127 = arith.divf %125, %126 : vector<10x1xf32>
    %128 = vector.broadcast %127 : vector<10x1xf32> to vector<10x32xf32>
    %129 = arith.subf %121, %128 : vector<10x32xf32>
    %130 = arith.mulf %129, %129 : vector<10x32xf32>
    %cst_39 = arith.constant dense<0.000000e+00> : vector<10xf32>
    %131 = vector.multi_reduction <add>, %130, %cst_39 [1] : vector<10x32xf32> to vector<10xf32>
    %132 = vector.shape_cast %131 : vector<10xf32> to vector<10x1xf32>
    %cst_40 = arith.constant 3.200000e+01 : f32
    %133 = vector.broadcast %cst_40 : f32 to vector<10x1xf32>
    %134 = arith.divf %132, %133 : vector<10x1xf32>
    %cst_41 = arith.constant 9.99999997E-7 : f32
    %135 = vector.broadcast %cst_41 : f32 to vector<10x1xf32>
    %136 = arith.addf %134, %135 : vector<10x1xf32>
    %137 = math.rsqrt %136 : vector<10x1xf32>
    %138 = vector.broadcast %137 : vector<10x1xf32> to vector<10x32xf32>
    %139 = arith.mulf %129, %138 : vector<10x32xf32>
    %140 = vector.broadcast %122 : vector<1x32xf32> to vector<10x32xf32>
    %141 = arith.mulf %139, %140 : vector<10x32xf32>
    %142 = vector.broadcast %123 : vector<1x32xf32> to vector<10x32xf32>
    %143 = arith.addf %141, %142 : vector<10x32xf32>
    %c320 = arith.constant 320 : index
    %c0_42 = arith.constant 0 : index
    %144 = vector.load %arg2[%c320, %c0_42] : memref<712x128xf32, #tpu.memory_space<vmem>>, vector<32x64xf32>
    %cst_43 = arith.constant dense<0.000000e+00> : vector<10x64xf32>
    %145 = tpu.matmul %143, %144, %cst_43 {dimension_numbers = #tpu.dot_dimension_numbers<[1], [0], [0], [1], [0, 0, 1, 1], [], []>} : vector<10x32xf32>, vector<32x64xf32>, vector<10x64xf32> -> vector<10x64xf32>
    %c352 = arith.constant 352 : index
    %c0_44 = arith.constant 0 : index
    %146 = vector.load %arg2[%c352, %c0_44] : memref<712x128xf32, #tpu.memory_space<vmem>>, vector<1x64xf32>
    %147 = vector.broadcast %146 : vector<1x64xf32> to vector<10x64xf32>
    %148 = arith.addf %145, %147 : vector<10x64xf32>
    %149 = arith.mulf %148, %148 : vector<10x64xf32>
    %150 = arith.mulf %148, %149 : vector<10x64xf32>
    %cst_45 = arith.constant 4.471500e-02 : f32
    %151 = vector.broadcast %cst_45 : f32 to vector<10x64xf32>
    %152 = arith.mulf %151, %150 : vector<10x64xf32>
    %153 = arith.addf %148, %152 : vector<10x64xf32>
    %cst_46 = arith.constant 0.797884583 : f32
    %154 = vector.broadcast %cst_46 : f32 to vector<10x64xf32>
    %155 = arith.mulf %154, %153 : vector<10x64xf32>
    %156 = math.tanh %155 : vector<10x64xf32>
    %cst_47 = arith.constant 1.000000e+00 : f32
    %157 = vector.broadcast %cst_47 : f32 to vector<10x64xf32>
    %158 = arith.addf %157, %156 : vector<10x64xf32>
    %cst_48 = arith.constant 5.000000e-01 : f32
    %159 = vector.broadcast %cst_48 : f32 to vector<10x64xf32>
    %160 = arith.mulf %159, %158 : vector<10x64xf32>
    %161 = arith.mulf %148, %160 : vector<10x64xf32>
    %c360 = arith.constant 360 : index
    %c0_49 = arith.constant 0 : index
    %162 = vector.load %arg2[%c360, %c0_49] : memref<712x128xf32, #tpu.memory_space<vmem>>, vector<64x32xf32>
    %cst_50 = arith.constant dense<0.000000e+00> : vector<10x32xf32>
    %163 = tpu.matmul %161, %162, %cst_50 {dimension_numbers = #tpu.dot_dimension_numbers<[1], [0], [0], [1], [0, 0, 1, 1], [], []>} : vector<10x64xf32>, vector<64x32xf32>, vector<10x32xf32> -> vector<10x32xf32>
    %164 = arith.addf %121, %163 : vector<10x32xf32>
    %c424 = arith.constant 424 : index
    %c0_51 = arith.constant 0 : index
    %165 = vector.load %arg2[%c424, %c0_51] : memref<712x128xf32, #tpu.memory_space<vmem>>, vector<1x32xf32>
    %166 = vector.broadcast %165 : vector<1x32xf32> to vector<10x32xf32>
    %167 = arith.addf %164, %166 : vector<10x32xf32>
    %c432 = arith.constant 432 : index
    %c0_52 = arith.constant 0 : index
    %168 = vector.load %arg2[%c432, %c0_52] : memref<712x128xf32, #tpu.memory_space<vmem>>, vector<1x32xf32>
    %c440 = arith.constant 440 : index
    %c0_53 = arith.constant 0 : index
    %169 = vector.load %arg2[%c440, %c0_53] : memref<712x128xf32, #tpu.memory_space<vmem>>, vector<1x32xf32>
    %cst_54 = arith.constant dense<0.000000e+00> : vector<10xf32>
    %170 = vector.multi_reduction <add>, %167, %cst_54 [1] : vector<10x32xf32> to vector<10xf32>
    %171 = vector.shape_cast %170 : vector<10xf32> to vector<10x1xf32>
    %cst_55 = arith.constant 3.200000e+01 : f32
    %172 = vector.broadcast %cst_55 : f32 to vector<10x1xf32>
    %173 = arith.divf %171, %172 : vector<10x1xf32>
    %174 = vector.broadcast %173 : vector<10x1xf32> to vector<10x32xf32>
    %175 = arith.subf %167, %174 : vector<10x32xf32>
    %176 = arith.mulf %175, %175 : vector<10x32xf32>
    %cst_56 = arith.constant dense<0.000000e+00> : vector<10xf32>
    %177 = vector.multi_reduction <add>, %176, %cst_56 [1] : vector<10x32xf32> to vector<10xf32>
    %178 = vector.shape_cast %177 : vector<10xf32> to vector<10x1xf32>
    %cst_57 = arith.constant 3.200000e+01 : f32
    %179 = vector.broadcast %cst_57 : f32 to vector<10x1xf32>
    %180 = arith.divf %178, %179 : vector<10x1xf32>
    %cst_58 = arith.constant 9.99999997E-7 : f32
    %181 = vector.broadcast %cst_58 : f32 to vector<10x1xf32>
    %182 = arith.addf %180, %181 : vector<10x1xf32>
    %183 = math.rsqrt %182 : vector<10x1xf32>
    %184 = vector.broadcast %183 : vector<10x1xf32> to vector<10x32xf32>
    %185 = arith.mulf %175, %184 : vector<10x32xf32>
    %186 = vector.broadcast %168 : vector<1x32xf32> to vector<10x32xf32>
    %187 = arith.mulf %185, %186 : vector<10x32xf32>
    %188 = vector.broadcast %169 : vector<1x32xf32> to vector<10x32xf32>
    %189 = arith.addf %187, %188 : vector<10x32xf32>
    %c448 = arith.constant 448 : index
    %c0_59 = arith.constant 0 : index
    %190 = vector.load %arg2[%c448, %c0_59] : memref<712x128xf32, #tpu.memory_space<vmem>>, vector<32x96xf32>
    %cst_60 = arith.constant dense<0.000000e+00> : vector<10x96xf32>
    %191 = tpu.matmul %189, %190, %cst_60 {dimension_numbers = #tpu.dot_dimension_numbers<[1], [0], [0], [1], [0, 0, 1, 1], [], []>} : vector<10x32xf32>, vector<32x96xf32>, vector<10x96xf32> -> vector<10x96xf32>
    %c480 = arith.constant 480 : index
    %c0_61 = arith.constant 0 : index
    %192 = vector.load %arg2[%c480, %c0_61] : memref<712x128xf32, #tpu.memory_space<vmem>>, vector<1x96xf32>
    %193 = vector.broadcast %192 : vector<1x96xf32> to vector<10x96xf32>
    %194 = arith.addf %191, %193 : vector<10x96xf32>
    %195 = vector.extract_strided_slice %194 {offsets = [0, 0], sizes = [10, 32], strides = [1, 1]} : vector<10x96xf32> to vector<10x32xf32>
    %196 = vector.extract_strided_slice %194 {offsets = [0, 32], sizes = [10, 32], strides = [1, 1]} : vector<10x96xf32> to vector<10x32xf32>
    %197 = vector.extract_strided_slice %194 {offsets = [0, 64], sizes = [10, 32], strides = [1, 1]} : vector<10x96xf32> to vector<10x32xf32>
    %198 = vector.extract_strided_slice %195 {offsets = [0, 0], sizes = [10, 8], strides = [1, 1]} : vector<10x32xf32> to vector<10x8xf32>
    %199 = vector.extract_strided_slice %196 {offsets = [0, 0], sizes = [10, 8], strides = [1, 1]} : vector<10x32xf32> to vector<10x8xf32>
    %cst_62 = arith.constant dense<0.000000e+00> : vector<10x10xf32>
    %200 = tpu.matmul %198, %199, %cst_62 {dimension_numbers = #tpu.dot_dimension_numbers<[1], [1], [0], [0], [0, 0, 1, 0], [], []>} : vector<10x8xf32>, vector<10x8xf32>, vector<10x10xf32> -> vector<10x10xf32>
    %201 = math.exp %200 : vector<10x10xf32>
    %202 = arith.mulf %201, %36 : vector<10x10xf32>
    %cst_63 = arith.constant dense<0.000000e+00> : vector<10xf32>
    %203 = vector.multi_reduction <add>, %202, %cst_63 [1] : vector<10x10xf32> to vector<10xf32>
    %204 = vector.shape_cast %203 : vector<10xf32> to vector<10x1xf32>
    %205 = tpu.reciprocal %204 {approx = true} : vector<10x1xf32> -> vector<10x1xf32>
    %206 = vector.broadcast %205 : vector<10x1xf32> to vector<10x10xf32>
    %207 = arith.mulf %202, %206 : vector<10x10xf32>
    %208 = vector.extract_strided_slice %197 {offsets = [0, 0], sizes = [10, 8], strides = [1, 1]} : vector<10x32xf32> to vector<10x8xf32>
    %cst_64 = arith.constant dense<0.000000e+00> : vector<10x8xf32>
    %209 = tpu.matmul %207, %208, %cst_64 {dimension_numbers = #tpu.dot_dimension_numbers<[1], [0], [0], [1], [0, 0, 1, 1], [], []>} : vector<10x10xf32>, vector<10x8xf32>, vector<10x8xf32> -> vector<10x8xf32>
    %210 = vector.extract_strided_slice %195 {offsets = [0, 8], sizes = [10, 8], strides = [1, 1]} : vector<10x32xf32> to vector<10x8xf32>
    %211 = vector.extract_strided_slice %196 {offsets = [0, 8], sizes = [10, 8], strides = [1, 1]} : vector<10x32xf32> to vector<10x8xf32>
    %cst_65 = arith.constant dense<0.000000e+00> : vector<10x10xf32>
    %212 = tpu.matmul %210, %211, %cst_65 {dimension_numbers = #tpu.dot_dimension_numbers<[1], [1], [0], [0], [0, 0, 1, 0], [], []>} : vector<10x8xf32>, vector<10x8xf32>, vector<10x10xf32> -> vector<10x10xf32>
    %213 = math.exp %212 : vector<10x10xf32>
    %214 = arith.mulf %213, %36 : vector<10x10xf32>
    %cst_66 = arith.constant dense<0.000000e+00> : vector<10xf32>
    %215 = vector.multi_reduction <add>, %214, %cst_66 [1] : vector<10x10xf32> to vector<10xf32>
    %216 = vector.shape_cast %215 : vector<10xf32> to vector<10x1xf32>
    %217 = tpu.reciprocal %216 {approx = true} : vector<10x1xf32> -> vector<10x1xf32>
    %218 = vector.broadcast %217 : vector<10x1xf32> to vector<10x10xf32>
    %219 = arith.mulf %214, %218 : vector<10x10xf32>
    %220 = vector.extract_strided_slice %197 {offsets = [0, 8], sizes = [10, 8], strides = [1, 1]} : vector<10x32xf32> to vector<10x8xf32>
    %cst_67 = arith.constant dense<0.000000e+00> : vector<10x8xf32>
    %221 = tpu.matmul %219, %220, %cst_67 {dimension_numbers = #tpu.dot_dimension_numbers<[1], [0], [0], [1], [0, 0, 1, 1], [], []>} : vector<10x10xf32>, vector<10x8xf32>, vector<10x8xf32> -> vector<10x8xf32>
    %222 = vector.extract_strided_slice %195 {offsets = [0, 16], sizes = [10, 8], strides = [1, 1]} : vector<10x32xf32> to vector<10x8xf32>
    %223 = vector.extract_strided_slice %196 {offsets = [0, 16], sizes = [10, 8], strides = [1, 1]} : vector<10x32xf32> to vector<10x8xf32>
    %cst_68 = arith.constant dense<0.000000e+00> : vector<10x10xf32>
    %224 = tpu.matmul %222, %223, %cst_68 {dimension_numbers = #tpu.dot_dimension_numbers<[1], [1], [0], [0], [0, 0, 1, 0], [], []>} : vector<10x8xf32>, vector<10x8xf32>, vector<10x10xf32> -> vector<10x10xf32>
    %225 = math.exp %224 : vector<10x10xf32>
    %226 = arith.mulf %225, %36 : vector<10x10xf32>
    %cst_69 = arith.constant dense<0.000000e+00> : vector<10xf32>
    %227 = vector.multi_reduction <add>, %226, %cst_69 [1] : vector<10x10xf32> to vector<10xf32>
    %228 = vector.shape_cast %227 : vector<10xf32> to vector<10x1xf32>
    %229 = tpu.reciprocal %228 {approx = true} : vector<10x1xf32> -> vector<10x1xf32>
    %230 = vector.broadcast %229 : vector<10x1xf32> to vector<10x10xf32>
    %231 = arith.mulf %226, %230 : vector<10x10xf32>
    %232 = vector.extract_strided_slice %197 {offsets = [0, 16], sizes = [10, 8], strides = [1, 1]} : vector<10x32xf32> to vector<10x8xf32>
    %cst_70 = arith.constant dense<0.000000e+00> : vector<10x8xf32>
    %233 = tpu.matmul %231, %232, %cst_70 {dimension_numbers = #tpu.dot_dimension_numbers<[1], [0], [0], [1], [0, 0, 1, 1], [], []>} : vector<10x10xf32>, vector<10x8xf32>, vector<10x8xf32> -> vector<10x8xf32>
    %234 = vector.extract_strided_slice %195 {offsets = [0, 24], sizes = [10, 8], strides = [1, 1]} : vector<10x32xf32> to vector<10x8xf32>
    %235 = vector.extract_strided_slice %196 {offsets = [0, 24], sizes = [10, 8], strides = [1, 1]} : vector<10x32xf32> to vector<10x8xf32>
    %cst_71 = arith.constant dense<0.000000e+00> : vector<10x10xf32>
    %236 = tpu.matmul %234, %235, %cst_71 {dimension_numbers = #tpu.dot_dimension_numbers<[1], [1], [0], [0], [0, 0, 1, 0], [], []>} : vector<10x8xf32>, vector<10x8xf32>, vector<10x10xf32> -> vector<10x10xf32>
    %237 = math.exp %236 : vector<10x10xf32>
    %238 = arith.mulf %237, %36 : vector<10x10xf32>
    %cst_72 = arith.constant dense<0.000000e+00> : vector<10xf32>
    %239 = vector.multi_reduction <add>, %238, %cst_72 [1] : vector<10x10xf32> to vector<10xf32>
    %240 = vector.shape_cast %239 : vector<10xf32> to vector<10x1xf32>
    %241 = tpu.reciprocal %240 {approx = true} : vector<10x1xf32> -> vector<10x1xf32>
    %242 = vector.broadcast %241 : vector<10x1xf32> to vector<10x10xf32>
    %243 = arith.mulf %238, %242 : vector<10x10xf32>
    %244 = vector.extract_strided_slice %197 {offsets = [0, 24], sizes = [10, 8], strides = [1, 1]} : vector<10x32xf32> to vector<10x8xf32>
    %cst_73 = arith.constant dense<0.000000e+00> : vector<10x8xf32>
    %245 = tpu.matmul %243, %244, %cst_73 {dimension_numbers = #tpu.dot_dimension_numbers<[1], [0], [0], [1], [0, 0, 1, 1], [], []>} : vector<10x10xf32>, vector<10x8xf32>, vector<10x8xf32> -> vector<10x8xf32>
    %246 = tpu.concatenate %209, %221, %233, %245 in 1 : vector<10x8xf32>, vector<10x8xf32>, vector<10x8xf32>, vector<10x8xf32> -> vector<10x32xf32>
    %c488 = arith.constant 488 : index
    %c0_74 = arith.constant 0 : index
    %247 = vector.load %arg2[%c488, %c0_74] : memref<712x128xf32, #tpu.memory_space<vmem>>, vector<32x32xf32>
    %cst_75 = arith.constant dense<0.000000e+00> : vector<10x32xf32>
    %248 = tpu.matmul %246, %247, %cst_75 {dimension_numbers = #tpu.dot_dimension_numbers<[1], [0], [0], [1], [0, 0, 1, 1], [], []>} : vector<10x32xf32>, vector<32x32xf32>, vector<10x32xf32> -> vector<10x32xf32>
    %249 = arith.addf %167, %248 : vector<10x32xf32>
    %c520 = arith.constant 520 : index
    %c0_76 = arith.constant 0 : index
    %250 = vector.load %arg2[%c520, %c0_76] : memref<712x128xf32, #tpu.memory_space<vmem>>, vector<1x32xf32>
    %251 = vector.broadcast %250 : vector<1x32xf32> to vector<10x32xf32>
    %252 = arith.addf %249, %251 : vector<10x32xf32>
    %c528 = arith.constant 528 : index
    %c0_77 = arith.constant 0 : index
    %253 = vector.load %arg2[%c528, %c0_77] : memref<712x128xf32, #tpu.memory_space<vmem>>, vector<1x32xf32>
    %c536 = arith.constant 536 : index
    %c0_78 = arith.constant 0 : index
    %254 = vector.load %arg2[%c536, %c0_78] : memref<712x128xf32, #tpu.memory_space<vmem>>, vector<1x32xf32>
    %cst_79 = arith.constant dense<0.000000e+00> : vector<10xf32>
    %255 = vector.multi_reduction <add>, %252, %cst_79 [1] : vector<10x32xf32> to vector<10xf32>
    %256 = vector.shape_cast %255 : vector<10xf32> to vector<10x1xf32>
    %cst_80 = arith.constant 3.200000e+01 : f32
    %257 = vector.broadcast %cst_80 : f32 to vector<10x1xf32>
    %258 = arith.divf %256, %257 : vector<10x1xf32>
    %259 = vector.broadcast %258 : vector<10x1xf32> to vector<10x32xf32>
    %260 = arith.subf %252, %259 : vector<10x32xf32>
    %261 = arith.mulf %260, %260 : vector<10x32xf32>
    %cst_81 = arith.constant dense<0.000000e+00> : vector<10xf32>
    %262 = vector.multi_reduction <add>, %261, %cst_81 [1] : vector<10x32xf32> to vector<10xf32>
    %263 = vector.shape_cast %262 : vector<10xf32> to vector<10x1xf32>
    %cst_82 = arith.constant 3.200000e+01 : f32
    %264 = vector.broadcast %cst_82 : f32 to vector<10x1xf32>
    %265 = arith.divf %263, %264 : vector<10x1xf32>
    %cst_83 = arith.constant 9.99999997E-7 : f32
    %266 = vector.broadcast %cst_83 : f32 to vector<10x1xf32>
    %267 = arith.addf %265, %266 : vector<10x1xf32>
    %268 = math.rsqrt %267 : vector<10x1xf32>
    %269 = vector.broadcast %268 : vector<10x1xf32> to vector<10x32xf32>
    %270 = arith.mulf %260, %269 : vector<10x32xf32>
    %271 = vector.broadcast %253 : vector<1x32xf32> to vector<10x32xf32>
    %272 = arith.mulf %270, %271 : vector<10x32xf32>
    %273 = vector.broadcast %254 : vector<1x32xf32> to vector<10x32xf32>
    %274 = arith.addf %272, %273 : vector<10x32xf32>
    %c544 = arith.constant 544 : index
    %c0_84 = arith.constant 0 : index
    %275 = vector.load %arg2[%c544, %c0_84] : memref<712x128xf32, #tpu.memory_space<vmem>>, vector<32x64xf32>
    %cst_85 = arith.constant dense<0.000000e+00> : vector<10x64xf32>
    %276 = tpu.matmul %274, %275, %cst_85 {dimension_numbers = #tpu.dot_dimension_numbers<[1], [0], [0], [1], [0, 0, 1, 1], [], []>} : vector<10x32xf32>, vector<32x64xf32>, vector<10x64xf32> -> vector<10x64xf32>
    %c576 = arith.constant 576 : index
    %c0_86 = arith.constant 0 : index
    %277 = vector.load %arg2[%c576, %c0_86] : memref<712x128xf32, #tpu.memory_space<vmem>>, vector<1x64xf32>
    %278 = vector.broadcast %277 : vector<1x64xf32> to vector<10x64xf32>
    %279 = arith.addf %276, %278 : vector<10x64xf32>
    %280 = arith.mulf %279, %279 : vector<10x64xf32>
    %281 = arith.mulf %279, %280 : vector<10x64xf32>
    %cst_87 = arith.constant 4.471500e-02 : f32
    %282 = vector.broadcast %cst_87 : f32 to vector<10x64xf32>
    %283 = arith.mulf %282, %281 : vector<10x64xf32>
    %284 = arith.addf %279, %283 : vector<10x64xf32>
    %cst_88 = arith.constant 0.797884583 : f32
    %285 = vector.broadcast %cst_88 : f32 to vector<10x64xf32>
    %286 = arith.mulf %285, %284 : vector<10x64xf32>
    %287 = math.tanh %286 : vector<10x64xf32>
    %cst_89 = arith.constant 1.000000e+00 : f32
    %288 = vector.broadcast %cst_89 : f32 to vector<10x64xf32>
    %289 = arith.addf %288, %287 : vector<10x64xf32>
    %cst_90 = arith.constant 5.000000e-01 : f32
    %290 = vector.broadcast %cst_90 : f32 to vector<10x64xf32>
    %291 = arith.mulf %290, %289 : vector<10x64xf32>
    %292 = arith.mulf %279, %291 : vector<10x64xf32>
    %c584 = arith.constant 584 : index
    %c0_91 = arith.constant 0 : index
    %293 = vector.load %arg2[%c584, %c0_91] : memref<712x128xf32, #tpu.memory_space<vmem>>, vector<64x32xf32>
    %cst_92 = arith.constant dense<0.000000e+00> : vector<10x32xf32>
    %294 = tpu.matmul %292, %293, %cst_92 {dimension_numbers = #tpu.dot_dimension_numbers<[1], [0], [0], [1], [0, 0, 1, 1], [], []>} : vector<10x64xf32>, vector<64x32xf32>, vector<10x32xf32> -> vector<10x32xf32>
    %295 = arith.addf %252, %294 : vector<10x32xf32>
    %c648 = arith.constant 648 : index
    %c0_93 = arith.constant 0 : index
    %296 = vector.load %arg2[%c648, %c0_93] : memref<712x128xf32, #tpu.memory_space<vmem>>, vector<1x32xf32>
    %297 = vector.broadcast %296 : vector<1x32xf32> to vector<10x32xf32>
    %298 = arith.addf %295, %297 : vector<10x32xf32>
    %299 = vector.extract_strided_slice %298 {offsets = [0, 0], sizes = [1, 32], strides = [1, 1]} : vector<10x32xf32> to vector<1x32xf32>
    %300 = vector.extract_strided_slice %298 {offsets = [5, 0], sizes = [1, 32], strides = [1, 1]} : vector<10x32xf32> to vector<1x32xf32>
    %301 = tpu.concatenate %299, %300 in 0 : vector<1x32xf32>, vector<1x32xf32> -> vector<2x32xf32>
    %c656 = arith.constant 656 : index
    %c0_94 = arith.constant 0 : index
    %302 = vector.load %arg2[%c656, %c0_94] : memref<712x128xf32, #tpu.memory_space<vmem>>, vector<1x32xf32>
    %c664 = arith.constant 664 : index
    %c0_95 = arith.constant 0 : index
    %303 = vector.load %arg2[%c664, %c0_95] : memref<712x128xf32, #tpu.memory_space<vmem>>, vector<1x32xf32>
    %cst_96 = arith.constant dense<0.000000e+00> : vector<2xf32>
    %304 = vector.multi_reduction <add>, %301, %cst_96 [1] : vector<2x32xf32> to vector<2xf32>
    %305 = vector.shape_cast %304 : vector<2xf32> to vector<2x1xf32>
    %cst_97 = arith.constant 3.200000e+01 : f32
    %306 = vector.broadcast %cst_97 : f32 to vector<2x1xf32>
    %307 = arith.divf %305, %306 : vector<2x1xf32>
    %308 = vector.broadcast %307 : vector<2x1xf32> to vector<2x32xf32>
    %309 = arith.subf %301, %308 : vector<2x32xf32>
    %310 = arith.mulf %309, %309 : vector<2x32xf32>
    %cst_98 = arith.constant dense<0.000000e+00> : vector<2xf32>
    %311 = vector.multi_reduction <add>, %310, %cst_98 [1] : vector<2x32xf32> to vector<2xf32>
    %312 = vector.shape_cast %311 : vector<2xf32> to vector<2x1xf32>
    %cst_99 = arith.constant 3.200000e+01 : f32
    %313 = vector.broadcast %cst_99 : f32 to vector<2x1xf32>
    %314 = arith.divf %312, %313 : vector<2x1xf32>
    %cst_100 = arith.constant 9.99999997E-7 : f32
    %315 = vector.broadcast %cst_100 : f32 to vector<2x1xf32>
    %316 = arith.addf %314, %315 : vector<2x1xf32>
    %317 = math.rsqrt %316 : vector<2x1xf32>
    %318 = vector.broadcast %317 : vector<2x1xf32> to vector<2x32xf32>
    %319 = arith.mulf %309, %318 : vector<2x32xf32>
    %320 = vector.broadcast %302 : vector<1x32xf32> to vector<2x32xf32>
    %321 = arith.mulf %319, %320 : vector<2x32xf32>
    %322 = vector.broadcast %303 : vector<1x32xf32> to vector<2x32xf32>
    %323 = arith.addf %321, %322 : vector<2x32xf32>
    %c672 = arith.constant 672 : index
    %c0_101 = arith.constant 0 : index
    %324 = vector.load %arg2[%c672, %c0_101] : memref<712x128xf32, #tpu.memory_space<vmem>>, vector<32x128xf32>
    %cst_102 = arith.constant dense<0.000000e+00> : vector<2x128xf32>
    %325 = tpu.matmul %323, %324, %cst_102 {dimension_numbers = #tpu.dot_dimension_numbers<[1], [0], [0], [1], [0, 0, 1, 1], [], []>} : vector<2x32xf32>, vector<32x128xf32>, vector<2x128xf32> -> vector<2x128xf32>
    %c704 = arith.constant 704 : index
    %c0_103 = arith.constant 0 : index
    %326 = vector.load %arg2[%c704, %c0_103] : memref<712x128xf32, #tpu.memory_space<vmem>>, vector<1x128xf32>
    %327 = vector.broadcast %326 : vector<1x128xf32> to vector<2x128xf32>
    %328 = arith.addf %325, %327 : vector<2x128xf32>
    %c0_104 = arith.constant 0 : index
    %c0_105 = arith.constant 0 : index
    %329 = vector.load %arg3[%c0_104, %c0_105] : memref<2x128xf32, #tpu.memory_space<vmem>>, vector<2x128xf32>
    tpu.vector_store %arg3[%c0_104, %c0_105], %328 {strides = array<i32>} : memref<2x128xf32, #tpu.memory_space<vmem>>, vector<2x128xf32>,
    return
  }
  func.func @transform_0(%arg0: i32) -> (i32, i32) {
    %c0_i32 = arith.constant 0 : i32
    %c0_i32_0 = arith.constant 0 : i32
    %c0_i32_1 = arith.constant 0 : i32
    return %c0_i32, %c0_i32_0 : i32, i32
  }
  func.func @transform_1(%arg0: i32) -> (i32, i32) {
    %c0_i32 = arith.constant 0 : i32
    %c0_i32_0 = arith.constant 0 : i32
    %c0_i32_1 = arith.constant 0 : i32
    return %c0_i32, %c0_i32_0 : i32, i32
  }
  func.func @transform_2(%arg0: i32) -> (i32, i32) {
    %c0_i32 = arith.constant 0 : i32
    %c0_i32_0 = arith.constant 0 : i32
    %c0_i32_1 = arith.constant 0 : i32
    return %c0_i32, %c0_i32_0 : i32, i32
  }
}

</mosaic_0001>

<bundles_post_ra>
// kernel: vit_forward.1
= control target key start
LH: loop header
LB: loop body
LE: loop exit
PB: predicated region body
PF: predicated region fallthrough
CT: control target
= control target key end

     0   :  { %v3735_v3 = vmov 0.0|0.0   ;;  %vm4406_vm0 = vcmask 523264   ;;  %s4402_s0 = inlined_call_operand.vmem [shape: f32[8,192], index: 0, kind: input, shape index: {}]   ;;  %s4403_s1 = inlined_call_operand.vmem [shape: f32[712,128], index: 1, kind: input, shape index: {}]   ;;  %s4404_s2 = inlined_call_operand.hbm [shape: f32[2,128], index: 2, kind: output, shape index: {}]  }
   0x1   :  { %v14_v0 = vld [vmem:[%s4403_s1] sm:$0xff]  ;;  %v15_v1 = vld [vmem:[%s4403_s1 + $0x8] sm:$0xff]  ;;  %v16_v2 = vld [vmem:[%s4403_s1 + $0x10] sm:$0xff]  ;;  %3304 = vmatprep.subr.bf16.mxu0 %v3735_v3 }
   0x2   :  { %v3305_v4 = vpack.c.bf16 %v15_v1, %v14_v0  ;;  %v17_v5 = vld [vmem:[%s4403_s1 + $0x18] sm:$0xff]  ;;  %v18_v7 = vld [vmem:[%s4403_s1 + $0x20] sm:$0xff]  ;;  %v19_v8 = vld [vmem:[%s4403_s1 + $0x28] sm:$0xff] }
   0x3   :  { %v3308_v6 = vpack.c.bf16 %v17_v5, %v16_v2  ;;  %v3311_v9 = vpack.c.bf16 %v19_v8, %v18_v7  ;;  %v20_v10 = vld [vmem:[%s4403_s1 + $0x30] sm:$0xff]  ;;  %v21_v11 = vld [vmem:[%s4403_s1 + $0x38] sm:$0xff]  ;;  %v13_v12 = vld [vmem:[%s4402_s0 + $0x8] sm:$0xff] }
   0x4   :  { %3306 = vmatpush1.bf16.msra.mxu0 %v3305_v4 }
   0x5   :  { %3307 = vmatprep.subr.bf16.mxu0 %v3735_v3 }
   0x8   :  { %3309 = vmatpush1.bf16.msra.mxu0 %v3308_v6 }
   0x9   :  { %3310 = vmatprep.subr.bf16.mxu0 %v3735_v3 }
   0xa   :  { %7 = vsyncpa [#allocation3], 0  ;;  %2857 = vmatprep.mubr.msk.f32.mxu0 %vm4406_vm0, %v13_v12  ;;  %v3314_v13 = vpack.c.bf16 %v21_v11, %v20_v10  ;;  %v22_v14 = vld [vmem:[%s4403_s1 + $0x40] sm:$0xff]  ;;  %v23_v15 = vld [vmem:[%s4403_s1 + $0x48] sm:$0xff]  ;;  %vm4405_vm1 = vcmask 1040384   ;;  %vm130_vm2 = vcmask 1044480  }
   0xb   :  { %v3317_v16 = vpack.c.bf16 %v23_v15, %v22_v14  ;;  %v24_v17 = vld [vmem:[%s4403_s1 + $0x50] sm:$0xff]  ;;  %v25_v18 = vld [vmem:[%s4403_s1 + $0x58] sm:$0xff]  ;;  %v26_v20 = vld [vmem:[%s4403_s1 + $0x60] sm:$0xff]  ;;  %vm132_vm3 = vcmask 1045504   ;;  %vm4408_vm4 = vcmask 261120   ;;  %vm4407_vm5 = vcmask 254976  }
   0xc   :  { %3312 = vmatpush1.bf16.msra.mxu0 %v3311_v9  ;;  %v3320_v19 = vpack.c.bf16 %v25_v18, %v24_v17  ;;  %v27_v21 = vld [vmem:[%s4403_s1 + $0x68] sm:$0xff]  ;;  %v28_v23 = vld [vmem:[%s4403_s1 + $0x70] sm:$0xff]  ;;  %v29_v24 = vld [vmem:[%s4403_s1 + $0x78] sm:$0xff]  ;;  %vm308_vm6 = vcmask 64512   ;;  %s3736_s22 = smov 64   ;;  %s3737_s23 = smov 96  }
   0xd   :  { %3313 = vmatprep.subr.bf16.mxu0 %v3735_v3  ;;  %v3323_v22 = vpack.c.bf16 %v27_v21, %v26_v20  ;;  %v3326_v25 = vpack.c.bf16 %v29_v24, %v28_v23  ;;  %v30_v26 = vld [vmem:[%s4403_s1 + $0x80] sm:$0xff]  ;;  %v31_v27 = vld [vmem:[%s4403_s1 + $0x88] sm:$0xff]  ;;  %v32_v29 = vld [vmem:[%s4403_s1 + $0x90] sm:$0xff]  ;;  %s3738_s24 = smov 88   ;;  %s3739_s25 = smov 120   ;;  %vm421_vm7 = vcmask 1041408  }
   0xe   :  { %v3329_v28 = vpack.c.bf16 %v31_v27, %v30_v26  ;;  %v33_v30 = vld [vmem:[%s4403_s1 + $0x98] sm:$0xff]  ;;  %v34_v32 = vld [vmem:[%s4403_s1 + $0xa0] sm:$0xff]  ;;  %v35_v33 = vld [vmem:[%s4403_s1 + $0xa8] sm:$0xff]  ;;  %vm3740_vm9 = vmmov 1   ;;  %s3742_s26 = smov 80   ;;  %s3743_s27 = smov 112  }
   0xf   :  { %v3332_v31 = vpack.c.bf16 %v33_v30, %v32_v29  ;;  %v3335_v34 = vpack.c.bf16 %v35_v33, %v34_v32  ;;  %v36_v35 = vld [vmem:[%s4403_s1 + $0xb0] sm:$0xff]  ;;  %v37_v36 = vld [vmem:[%s4403_s1 + $0xb8] sm:$0xff]  ;;  %v12_v38 = vld [vmem:[%s4402_s0] sm:$0xff]  ;;  %s3744_s28 = smov 56   ;;  %s3745_s29 = smov 72  }
  0x10   :  { %3315 = vmatpush1.bf16.msra.mxu0 %v3314_v13  ;;  %v3338_v37 = vpack.c.bf16 %v37_v36, %v36_v35  ;;  %v113_v39 = vld [vmem:[%s4403_s1 + $0xc8] sm:$0xf]  ;;  %v112_v41 = vld [vmem:[%s4403_s1 + $0xc0] sm:$0x1]  ;;  %v214_v2 = vld [vmem:[%s4403_s1 + $0xf0] sm:$0xff]  ;;  %s3746_s30 = smov 104  }
  0x11   :  { %3316 = vmatprep.subr.bf16.mxu0 %v3735_v3  ;;  %v116_v40 = vrot.slane %v113_v39, 4  ;;  %v123_v46 = vrot.slane %v112_v41, 3  ;;  %v212_v0 = vld [vmem:[%s4403_s1 + $0xe0] sm:$0xff]  ;;  %v213_v1 = vld [vmem:[%s4403_s1 + $0xe8] sm:$0xff]  ;;  %v215_v5 = vld [vmem:[%s4403_s1 + $0xf8] sm:$0xff]  ;;  %s3747_s3 = smov 48  }
  0x12   :  { %v3340_v4 = vpack.c.bf16 %v213_v1, %v212_v0  ;;  %v3344_v6 = vpack.c.bf16 %v215_v5, %v214_v2  ;;  %v2860_v14 = vld [vmem:[%s4403_s1 + $0xd0] ss:$0 sm:$0xff]  ;;  %v2862_v23 = vld [vmem:[%s4403_s1 + $0x100] ss:$0 sm:$0xff]  ;;  %vm3923_vm8 = vmpackc.low %vm308_vm6, %vm308_vm6  ;;  %s3748_s4 = smov 8   ;;  %s3749_s5 = smov 40  }
  0x13   :  { %vm3927_vm10 = vmpackc.low %vm421_vm7, %vm3740_vm9  ;;  %s3750_s6 = smov 16   ;;  %s3751_s14 = smov 24  }
  0x14   :  { %3318 = vmatpush1.bf16.msra.mxu0 %v3317_v16  ;;  %3341 = vmatprep.subr.bf16.mxu1 %v3340_v4  ;;  %v2861_v16 = vld [vmem:[%s4403_s1 + $0xd8] ss:$0 sm:$0xff]  ;;  %s3753_s16 = smov [#allocation2]  }
  0x15   :  { %3319 = vmatprep.subr.bf16.mxu0 %v3735_v3  ;;  %3343 = vmatpush3.bf16.msra.mxu1 %v3340_v4  ;;  %s2849_s17 = sshll.u32 %s3753_s16, 4  ;;  %s2850_s17 = int_to_ptr.vmem [resolvable:$true] %s2849_s17 }
  0x16   :  { %3345 = vmatprep.subr.bf16.mxu1 %v3344_v6  ;;  %p3716_p1 = scmp.lt.s32.totalorder %s2850_s17, %s2850_s17 }
  0x18   :  { %3321 = vmatpush1.bf16.msra.mxu0 %v3320_v19 }
  0x19   :  { %3322 = vmatprep.subr.bf16.mxu0 %v3735_v3  ;;  %3347 = vmatpush3.bf16.msra.mxu1 %v3344_v6 }
  0x1c   :  { %3324 = vmatpush1.bf16.msra.mxu0 %v3323_v22 }
  0x1d   :  { %3325 = vmatprep.subr.bf16.mxu0 %v3735_v3 }
  0x20   :  { %3327 = vmatpush1.bf16.msra.mxu0 %v3326_v25 }
  0x21   :  { %3328 = vmatprep.subr.bf16.mxu0 %v3735_v3 }
  0x24   :  { %3330 = vmatpush1.bf16.msra.mxu0 %v3329_v28 }
  0x25   :  { %3331 = vmatprep.subr.bf16.mxu0 %v3735_v3 }
  0x28   :  { %3333 = vmatpush1.bf16.msra.mxu0 %v3332_v31 }
  0x29   :  { %3334 = vmatprep.subr.bf16.mxu0 %v3735_v3 }
  0x2c   :  { %3336 = vmatpush1.bf16.msra.mxu0 %v3335_v34 }
  0x2d   :  { %3337 = vmatprep.subr.bf16.mxu0 %v3735_v3 }
  0x30   :  { %3339 = vmatpush1.bf16.msra.mxu0 %v3338_v37  ;;  %v2396_v37 = vld [vmem:[%s4403_s1 + $0x1f8] sm:$0xff] }
  0x33   :  { %107 = vmatmul.mubr.f32.vlgmr.msra.gmra.mrb[0].mxu0 %v12_v38 }
 0x106   :  { %v108_v42 = vpop.f32.mrb[0].mxu0 }
 0x107   :  { %v114_v43 = vadd.f32 %v113_v39, %v108_v42  ;;  %v118_v44 = vadd.f32 %v116_v40, %v108_v42  ;;  %v110_v45 = vpop.f32.mrb[1].mxu0 }
 0x109   :  { %v120_v47 = vrot.slane %v114_v43, 7  ;;  %v3866_v48 = vrot.slane %v118_v44, 6  ;;  %v134_v43 = vlaneseq }
 0x10b   :  { %v129_v49 = vsel %vm4405_vm1, %v112_v41, %v120_v47  ;;  %v176_v53 = vsel %vm4407_vm5, %v3866_v48, 0.0  ;;  %v135_v44 = vshrl.u32 %v134_v43, 7  ;;  %v138_v45 = vand.u32 127, %v134_v43 }
 0x10c   :  { %v131_v50 = vsel %vm130_vm2, %v129_v49, %v123_v46 }
 0x10d   :  { %v3870_v51 = vsel %vm132_vm3, %v131_v50, %v3866_v48  ;;  %v136_v46 = vadd.s32 8, %v135_v44  ;;  %vm157_vm11 = vcmp.ge.s32.totalorder %v138_v45, 5  ;;  %vm151_vm12 = vcmp.ge.s32.totalorder %v135_v44, 5 }
 0x10e   :  { %v172_v52 = vsel %vm4408_vm4, %v3870_v51, 0.0  ;;  %vm141_vm14 = vcmp.lt.s32.totalorder %v135_v44, 5  ;;  %vm148_vm15 = vcmp.lt.s32.totalorder %v138_v45, 5  ;;  %vm160_vm2 = vcmp.lt.s32.totalorder %v138_v45, 10  ;;  %vm158_vm3 = vmand %vm151_vm12, %vm157_vm11 }
 0x10f   :  { %173 = vadd.xlane.f32.xlu0 %v172_v52  ;;  %vm154_vm13 = vcmp.lt.s32.totalorder %v136_v46, 10  ;;  %vm149_vm9 = vmand %vm141_vm14, %vm148_vm15 }
 0x110   :  { %vm159_vm7 = vmand %vm154_vm13, %vm157_vm11  ;;  %vm398_vm11 = vcmask 80896   ;;  %vm4415_vm13 = vcmask 254976  }
 0x111   :  { %vm161_vm1 = vmand %vm158_vm3, %vm160_vm2 }
 0x112   :  { %vm162_vm0 = vmand %vm159_vm7, %vm160_vm2 }
 0x113   :  { %177 = vadd.xlane.f32.xlu0 %v176_v53  ;;  %v3741_v53 = vmov 0.0   ;;  %vm4418_vm2 = vmmov %vm4415_vm13 }
 0x19c   :  { %v174_v54 = vpop.xlane.xlu0 %173 }
 0x19d   :  { %v180_v55 = vmul.f32 0.03125, %v174_v54  ;;  %v3944_v54 = vsel %vm162_vm0, 1.0, %v3741_v53  ;;  %vm1110_vm0 = vcmask 130048  }
 0x19f   :  { %v182_v56 = vsub.f32 %v3870_v51, %v180_v55 }
 0x1a0   :  { %v178_v57 = vpop.xlane.xlu0 %177 }
 0x1a1   :  { %v181_v58 = vmul.f32 0.03125, %v178_v57  ;;  %v184_v59 = vmul.f32 %v182_v56, %v182_v56 }
 0x1a3   :  { %v183_v60 = vsub.f32 %v3866_v48, %v181_v58  ;;  %v186_v61 = vsel %vm4408_vm4, %v184_v59, 0.0 }
 0x1a4   :  { %187 = vadd.xlane.f32.xlu1 %v186_v61 }
 0x1a5   :  { %v185_v62 = vmul.f32 %v183_v60, %v183_v60 }
 0x1a7   :  { %v189_v63 = vsel %vm4407_vm5, %v185_v62, 0.0  ;;  %vm163_vm5 = vmor %vm149_vm9, %vm161_vm1  ;;  %vm1113_vm1 = vcmask 195584   ;;  %vm4421_vm9 = vcmask 523264  }
 0x1a8   :  { %190 = vadd.xlane.f32.xlu1 %v189_v63 }
 0x231   :  { %v188_v7 = vpop.xlane.xlu1 %187 }
 0x232   :  { %v192_v8 = vmul.f32 0.03125, %v188_v7 }
 0x234   :  { %v194_v9 = vadd.f32 1e-06, %v192_v8 }
 0x235   :  { %v191_v10 = vpop.xlane.xlu1 %190 }
 0x236   :  { %3621 = vrsqrt.f32 %v194_v9  ;;  %v193_v11 = vmul.f32 0.03125, %v191_v10 }
 0x238   :  { %v195_v12 = vadd.f32 1e-06, %v193_v11 }
 0x23a   :  { %3623 = vrsqrt.f32 %v195_v12 }
 0x240   :  { %v3622_v13 = vpop.eup %3621 }
 0x241   :  { %v198_v15 = vmul.f32 %v3622_v13, %v182_v56  ;;  %v3947_v56 = vsel %vm163_vm5, 1.0, %v3741_v53  ;;  %vm4413_vm5 = vcmask 261120  }
 0x242   :  { %vm4414_vm12 = vmmov %vm4413_vm5 }
 0x243   :  { %v204_v17 = vmul.f32 %v2860_v14, %v198_v15  ;;  %vm4416_vm14 = vmmov %vm4413_vm5 }
 0x244   :  { %v3624_v18 = vpop.eup %3623  ;;  %vm4417_vm15 = vmmov %vm4413_vm5 }
 0x245   :  { %v199_v19 = vmul.f32 %v3624_v18, %v183_v60  ;;  %v210_v20 = vadd.f32 %v2861_v16, %v204_v17  ;;  %vm4419_vm3 = vmmov %vm4413_vm5 }
 0x246   :  { %vm4420_vm7 = vmmov %vm4419_vm3 }
 0x247   :  { %v205_v21 = vmul.f32 %v2860_v14, %v199_v19  ;;  %3085 = vmatprep.mubr.msk.f32.mxu1 %vm4408_vm4, %v210_v20 }
 0x249   :  { %v211_v22 = vadd.f32 %v2861_v16, %v205_v21 }
 0x24b   :  { %3086 = vmatmul.mubr.msk.f32.vlgmr.msra.gmra.mrb[0].mxu1 %vm4408_vm4, %v211_v22  ;;  %vm402_vm4 = vcmask 74752  }
 0x31e   :  { %v3087_v24 = vpop.f32.mrb[0].mxu1 }
 0x31f   :  { %v3903_v25 = vadd.f32 %v3087_v24, %v2862_v23  ;;  %v293_v26 = vpop.f32.mrb[1].mxu1 }
 0x320   :  { %v3905_v27 = vadd.f32 %v2862_v23, %v293_v26 }
 0x322   :  { %3092 = vmatprep.mubr.msk.f32.mxu1 %vm308_vm6, %v3905_v27  ;;  %v3911_v28 = vpack.i.bf16 %v3903_v25, %v3905_v27 }
 0x324   :  { %3547 = vrot.lane.b32.xlu1 %v3911_v28, %s3736_s22  ;;  %3542 = vrot.lane.b32.xlu0 %v3911_v28, %s3737_s23 }
 0x328   :  { %3552 = vrot.lane.b32.xlu0 %v3911_v28, %s3738_s24 }
 0x32c   :  { %501 = vrot.lane.b32.xlu0 %v3903_v25, %s3739_s25 }
 0x396   :  { %v3548_v29 = vpop.permute.xlu1 %3547  ;;  %v3543_v30 = vpop.permute.xlu0 %3542 }
 0x397   :  { %v3550_v31 = vunpack.i.h.bf16 %v3548_v29  ;;  %v3549_v32 = vunpack.i.l.bf16 %v3548_v29  ;;  %v3545_v33 = vunpack.i.h.bf16 %v3543_v30  ;;  %v3544_v34 = vunpack.i.l.bf16 %v3543_v30 }
 0x399   :  { %v3348_v36 = vpack.c.bf16 %v3545_v33, %v3544_v34  ;;  %v3354_v38 = vpack.c.bf16 %v3550_v31, %v3549_v32 }
 0x39a   :  { %v3553_v39 = vpop.permute.xlu0 %3552 }
 0x39b   :  { %3350 = vmatprep.subr.msk.bf16.mxu1 %vm3923_vm8, %v3348_v36  ;;  %v3555_v40 = vunpack.i.h.bf16 %v3553_v39  ;;  %v3554_v41 = vunpack.i.l.bf16 %v3553_v39 }
 0x39c   :  { %3353 = vmatpush3.bf16.xpose.msk.msra.mxu1 %vm3923_vm8, %v3348_v36 }
 0x39d   :  { %3356 = vmatprep.subr.msk.bf16.mxu1 %vm3927_vm10, %v3354_v38  ;;  %v3360_v42 = vpack.c.bf16 %v3555_v40, %v3554_v41 }
 0x39e   :  { %v502_v6 = vpop.permute.xlu0 %501 }
 0x3a3   :  { %3093 = vmatmul.mubr.msk.f32.vlgmr.msra.gmra.mrb[2].mxu1 %vm308_vm6, %v3903_v25 }
 0x3a4   :  { %3359 = vmatpush3.bf16.msk.msra.mxu1 %vm3927_vm10, %v3354_v38 }
 0x3a5   :  { %3362 = vmatprep.subr.msk.bf16.mxu1 %vm3923_vm8, %v3360_v42 }
 0x476   :  { %v3094_v47 = vpop.f32.mrb[2].mxu1 }
 0x477   :  { %v394_v49 = vmul.f32 1.442695, %v3094_v47  ;;  %v383_v50 = vpop.f32.mrb[3].mxu1 }
 0x478   :  { %v392_v52 = vmul.f32 1.442695, %v383_v50 }
 0x479   :  { %3625 = vpow2.f32 %v394_v49 }
 0x47a   :  { %3627 = vpow2.f32 %v392_v52 }
 0x483   :  { %v3626_v55 = vpop.eup %3625 }
 0x484   :  { %v3628_v57 = vpop.eup %3627  ;;  %v397_v58 = vmul.f32 %v3626_v55, %v3944_v54 }
 0x485   :  { %v396_v60 = vmul.f32 %v3628_v57, %v3947_v56 }
 0x486   :  { %v403_v59 = vsel %vm402_vm4, %v397_v58, 0.0 }
 0x487   :  { %404 = vadd.xlane.f32.xlu1 %v403_v59  ;;  %v399_v61 = vsel %vm398_vm11, %v396_v60, 0.0 }
 0x48b   :  { %400 = vadd.xlane.f32.xlu1 %v399_v61 }
 0x49c   :  { %499 = vrot.lane.b32.xlu1 %v3905_v27, %s3739_s25 }
 0x4a0   :  { %3562 = vrot.lane.b32.xlu1 %v3911_v28, %s3742_s26 }
 0x514   :  { %v405_v62 = vpop.xlane.xlu1 %404 }
 0x515   :  { %3629 = vrcp.f32 %v405_v62 }
 0x518   :  { %v401_v63 = vpop.xlane.xlu1 %400 }
 0x519   :  { %3631 = vrcp.f32 %v401_v63 }
 0x51c   :  { %v500_v5 = vpop.permute.xlu1 %499 }
 0x51f   :  { %v3630_v0 = vpop.eup %3629 }
 0x520   :  { %v409_v4 = vmul.f32 %v3630_v0, %v397_v58  ;;  %v3563_v19 = vpop.permute.xlu1 %3562 }
 0x521   :  { %v3565_v23 = vunpack.i.h.bf16 %v3563_v19  ;;  %v3564_v24 = vunpack.i.l.bf16 %v3563_v19 }
 0x523   :  { %v3632_v1 = vpop.eup %3631  ;;  %v3372_v31 = vpack.c.bf16 %v3565_v23, %v3564_v24 }
 0x524   :  { %v408_v2 = vmul.f32 %v3632_v1, %v396_v60 }
 0x526   :  { %3099 = vmatprep.mubr.msk.f32.mxu1 %vm398_vm11, %v408_v2 }
 0x527   :  { %3100 = vmatmul.mubr.msk.f32.vlgmr.msra.gmra.mrb[4].mxu1 %vm398_vm11, %v409_v4 }
 0x528   :  { %3365 = vmatpush3.bf16.xpose.msk.msra.mxu1 %vm3923_vm8, %v3360_v42  ;;  %3106 = vmatprep.mubr.msk.f32.mxu1 %vm308_vm6, %v500_v5 }
 0x52f   :  { %3107 = vmatmul.mubr.msk.f32.vlgmr.msra.gmra.mrb[6].mxu1 %vm308_vm6, %v502_v6 }
 0x5fa   :  { %v3963_v7 = vpop.f32.mrb[4].mxu1 }
 0x5fb   :  { %v3965_v8 = vpop.f32.mrb[5].mxu1 }
 0x602   :  { %v3108_v9 = vpop.f32.mrb[6].mxu1 }
 0x603   :  { %v592_v10 = vmul.f32 1.442695, %v3108_v9  ;;  %v581_v11 = vpop.f32.mrb[7].mxu1 }
 0x604   :  { %v590_v12 = vmul.f32 1.442695, %v581_v11 }
 0x605   :  { %3633 = vpow2.f32 %v592_v10 }
 0x606   :  { %3635 = vpow2.f32 %v590_v12 }
 0x60f   :  { %v3634_v13 = vpop.eup %3633 }
 0x610   :  { %v3636_v14 = vpop.eup %3635  ;;  %v595_v15 = vmul.f32 %v3634_v13, %v3944_v54 }
 0x611   :  { %v594_v16 = vmul.f32 %v3636_v14, %v3947_v56 }
 0x612   :  { %v599_v17 = vsel %vm402_vm4, %v595_v15, 0.0 }
 0x613   :  { %600 = vadd.xlane.f32.xlu0 %v599_v17  ;;  %v596_v18 = vsel %vm398_vm11, %v594_v16, 0.0 }
 0x614   :  { %597 = vadd.xlane.f32.xlu1 %v596_v18 }
 0x625   :  { %694 = vrot.lane.b32.xlu1 %v3905_v27, %s3743_s27 }
 0x629   :  { %3557 = vrot.lane.b32.xlu0 %v3911_v28, %s3744_s28  ;;  %3572 = vrot.lane.b32.xlu1 %v3911_v28, %s3745_s29 }
 0x62d   :  { %696 = vrot.lane.b32.xlu0 %v3903_v25, %s3743_s27 }
 0x6a0   :  { %v601_v20 = vpop.xlane.xlu0 %600 }
 0x6a1   :  { %3637 = vrcp.f32 %v601_v20  ;;  %v598_v21 = vpop.xlane.xlu1 %597 }
 0x6a2   :  { %3639 = vrcp.f32 %v598_v21 }
 0x6a4   :  { %v3558_v22 = vpop.permute.xlu0 %3557 }
 0x6a5   :  { %v3560_v26 = vunpack.i.h.bf16 %v3558_v22  ;;  %v3559_v29 = vunpack.i.l.bf16 %v3558_v22  ;;  %v695_v38 = vpop.permute.xlu1 %694 }
 0x6a7   :  { %v3366_v30 = vpack.c.bf16 %v3560_v26, %v3559_v29 }
 0x6a8   :  { %v697_v39 = vpop.permute.xlu0 %696 }
 0x6a9   :  { %3368 = vmatprep.subr.msk.bf16.mxu1 %vm3927_vm10, %v3366_v30  ;;  %v3573_v57 = vpop.permute.xlu1 %3572 }
 0x6aa   :  { %3371 = vmatpush3.bf16.msk.msra.mxu1 %vm3927_vm10, %v3366_v30  ;;  %v3575_v61 = vunpack.i.h.bf16 %v3573_v57  ;;  %v3574_v62 = vunpack.i.l.bf16 %v3573_v57 }
 0x6ab   :  { %v3638_v32 = vpop.eup %3637  ;;  %3374 = vmatprep.subr.msk.bf16.mxu1 %vm3923_vm8, %v3372_v31 }
 0x6ac   :  { %v3640_v33 = vpop.eup %3639  ;;  %v605_v36 = vmul.f32 %v3638_v32, %v595_v15  ;;  %v3384_v2 = vpack.c.bf16 %v3575_v61, %v3574_v62 }
 0x6ad   :  { %v604_v34 = vmul.f32 %v3640_v33, %v594_v16 }
 0x6af   :  { %3113 = vmatprep.mubr.msk.f32.mxu1 %vm398_vm11, %v604_v34  ;;  %v1116_v34 = vld [vmem:[%s4403_s1 + $0x108] sm:$0xff] }
 0x6b0   :  { %3114 = vmatmul.mubr.msk.f32.vlgmr.msra.gmra.mrb[8].mxu1 %vm398_vm11, %v605_v36  ;;  %v1117_v36 = vld [vmem:[%s4403_s1 + $0x110] sm:$0xff] }
 0x6b1   :  { %3120 = vmatprep.mubr.msk.f32.mxu1 %vm308_vm6, %v695_v38  ;;  %v1118_v38 = vld [vmem:[%s4403_s1 + $0x118] sm:$0xff] }
 0x6b3   :  { %3377 = vmatpush3.bf16.xpose.msk.msra.mxu1 %vm3923_vm8, %v3372_v31 }
 0x6ba   :  { %3121 = vmatmul.mubr.msk.f32.vlgmr.msra.gmra.mrb[10].mxu1 %vm308_vm6, %v697_v39  ;;  %v3396_v39 = vpack.c.bf16 %v1117_v36, %v1116_v34 }
 0x6bc   :  { %3397 = vmatprep.subr.bf16.mxu0 %v3396_v39 }
 0x6bd   :  { %3399 = vmatpush3.bf16.msra.mxu0 %v3396_v39  ;;  %v1358_v39 = vld [vmem:[%s4403_s1 + $0x168] sm:$0xff] }
 0x783   :  { %v3991_v40 = vpop.f32.mrb[8].mxu1 }
 0x784   :  { %v685_v41 = vpop.f32.mrb[9].mxu1 }
 0x78d   :  { %v3122_v42 = vpop.f32.mrb[10].mxu1 }
 0x78e   :  { %v787_v43 = vmul.f32 1.442695, %v3122_v42  ;;  %v776_v44 = vpop.f32.mrb[11].mxu1 }
 0x78f   :  { %v785_v45 = vmul.f32 1.442695, %v776_v44 }
 0x790   :  { %3641 = vpow2.f32 %v787_v43 }
 0x791   :  { %3643 = vpow2.f32 %v785_v45 }
 0x79a   :  { %v3642_v46 = vpop.eup %3641 }
 0x79b   :  { %v3644_v47 = vpop.eup %3643  ;;  %v790_v49 = vmul.f32 %v3642_v46, %v3944_v54 }
 0x79c   :  { %v789_v50 = vmul.f32 %v3644_v47, %v3947_v56 }
 0x79d   :  { %v794_v52 = vsel %vm402_vm4, %v790_v49, 0.0 }
 0x79e   :  { %795 = vadd.xlane.f32.xlu0 %v794_v52  ;;  %v791_v55 = vsel %vm398_vm11, %v789_v50, 0.0 }
 0x79f   :  { %792 = vadd.xlane.f32.xlu1 %v791_v55 }
 0x7b0   :  { %889 = vrot.lane.b32.xlu1 %v3905_v27, %s3746_s30 }
 0x7b4   :  { %3567 = vrot.lane.b32.xlu0 %v3911_v28, %s3747_s3 }
 0x7b8   :  { %891 = vrot.lane.b32.xlu0 %v3903_v25, %s3746_s30 }
 0x82b   :  { %v796_v58 = vpop.xlane.xlu0 %795 }
 0x82c   :  { %3645 = vrcp.f32 %v796_v58  ;;  %v793_v59 = vpop.xlane.xlu1 %792 }
 0x82d   :  { %3647 = vrcp.f32 %v793_v59 }
 0x82f   :  { %v3568_v60 = vpop.permute.xlu0 %3567 }
 0x830   :  { %v3570_v63 = vunpack.i.h.bf16 %v3568_v60  ;;  %v3569_v0 = vunpack.i.l.bf16 %v3568_v60  ;;  %v890_v6 = vpop.permute.xlu1 %889 }
 0x832   :  { %v3378_v1 = vpack.c.bf16 %v3570_v63, %v3569_v0 }
 0x833   :  { %v892_v9 = vpop.permute.xlu0 %891 }
 0x834   :  { %3380 = vmatprep.subr.msk.bf16.mxu1 %vm3927_vm10, %v3378_v1 }
 0x835   :  { %3383 = vmatpush3.bf16.msk.msra.mxu1 %vm3927_vm10, %v3378_v1 }
 0x836   :  { %v3646_v27 = vpop.eup %3645  ;;  %3386 = vmatprep.subr.msk.bf16.mxu1 %vm3923_vm8, %v3384_v2 }
 0x837   :  { %v3648_v25 = vpop.eup %3647  ;;  %v800_v5 = vmul.f32 %v3646_v27, %v790_v49 }
 0x838   :  { %v799_v4 = vmul.f32 %v3648_v25, %v789_v50 }
 0x83a   :  { %3127 = vmatprep.mubr.msk.f32.mxu1 %vm398_vm11, %v799_v4 }
 0x83b   :  { %3128 = vmatmul.mubr.msk.f32.vlgmr.msra.gmra.mrb[12].mxu1 %vm398_vm11, %v800_v5 }
 0x83c   :  { %3134 = vmatprep.mubr.msk.f32.mxu1 %vm308_vm6, %v890_v6 }
 0x83e   :  { %3389 = vmatpush3.bf16.xpose.msk.msra.mxu1 %vm3923_vm8, %v3384_v2 }
 0x845   :  { %3135 = vmatmul.mubr.msk.f32.vlgmr.msra.gmra.mrb[14].mxu1 %vm308_vm6, %v892_v9 }
 0x90e   :  { %v3129_v10 = vpop.f32.mrb[12].mxu1 }
 0x90f   :  { %v880_v11 = vpop.f32.mrb[13].mxu1 }
 0x918   :  { %v3136_v12 = vpop.f32.mrb[14].mxu1 }
 0x919   :  { %v982_v13 = vmul.f32 1.442695, %v3136_v12  ;;  %v971_v14 = vpop.f32.mrb[15].mxu1 }
 0x91a   :  { %v980_v15 = vmul.f32 1.442695, %v971_v14  ;;  %v1251_v14 = vld [vmem:[%s4403_s1 + $0x148] sm:$0xff] }
 0x91b   :  { %3649 = vpow2.f32 %v982_v13  ;;  %v1250_v13 = vld [vmem:[%s4403_s1 + $0x140] sm:$0xff] }
 0x91c   :  { %3651 = vpow2.f32 %v980_v15  ;;  %v3404_v15 = vpack.c.bf16 %v1251_v14, %v1250_v13 }
 0x925   :  { %v3650_v16 = vpop.eup %3649 }
 0x926   :  { %v3652_v17 = vpop.eup %3651  ;;  %v985_v18 = vmul.f32 %v3650_v16, %v3944_v54  ;;  %v1252_v16 = vld [vmem:[%s4403_s1 + $0x150] sm:$0xff] }
 0x927   :  { %v984_v19 = vmul.f32 %v3652_v17, %v3947_v56  ;;  %v1253_v17 = vld [vmem:[%s4403_s1 + $0x158] sm:$0xff] }
 0x928   :  { %v989_v20 = vsel %vm402_vm4, %v985_v18, 0.0 }
 0x929   :  { %990 = vadd.xlane.f32.xlu0 %v989_v20  ;;  %v986_v21 = vsel %vm398_vm11, %v984_v19, 0.0 }
 0x92a   :  { %987 = vadd.xlane.f32.xlu1 %v986_v21 }
 0x93b   :  { %1086 = vrot.lane.b32.xlu1 %v685_v41, %s3748_s4 }
 0x93f   :  { %3577 = vrot.lane.b32.xlu0 %v3911_v28, %s3749_s5  ;;  %1088 = vrot.lane.b32.xlu1 %v3991_v40, %s3748_s4  ;;  %v1119_v40 = vld [vmem:[%s4403_s1 + $0x120] sm:$0xff] }
 0x940   :  { %v3400_v41 = vpack.c.bf16 %v1119_v40, %v1118_v38  ;;  %v1359_v40 = vld [vmem:[%s4403_s1 + $0x170] sm:$0xff] }
 0x942   :  { %3401 = vmatprep.subr.bf16.mxu0 %v3400_v41 }
 0x943   :  { %1094 = vrot.lane.b32.xlu0 %v880_v11, %s3750_s6  ;;  %1096 = vrot.lane.b32.xlu1 %v3129_v10, %s3750_s6 }
 0x944   :  { %3403 = vmatpush3.bf16.msra.mxu0 %v3400_v41  ;;  %v3412_v41 = vpack.c.bf16 %v1359_v40, %v1358_v39  ;;  %v1499_v39 = vld [vmem:[%s4403_s1 + $0x1d8] sm:$0xff] }
 0x946   :  { %3413 = vmatprep.subr.bf16.mxu0 %v3412_v41 }
 0x9b6   :  { %v991_v22 = vpop.xlane.xlu0 %990 }
 0x9b7   :  { %3653 = vrcp.f32 %v991_v22  ;;  %v988_v23 = vpop.xlane.xlu1 %987 }
 0x9b8   :  { %3655 = vrcp.f32 %v988_v23 }
 0x9ba   :  { %v3578_v24 = vpop.permute.xlu0 %3577 }
 0x9bb   :  { %v3580_v26 = vunpack.i.h.bf16 %v3578_v24  ;;  %v3579_v29 = vunpack.i.l.bf16 %v3578_v24  ;;  %v1087_v44 = vpop.permute.xlu1 %1086 }
 0x9bc   :  { %v1108_v49 = vsel %vm308_vm6, %v3965_v8, %v1087_v44  ;;  %v2895_v8 = vld [vmem:[%s4403_s1 + $0x128] ss:$0 sm:$0xff] }
 0x9bd   :  { %v3390_v30 = vpack.c.bf16 %v3580_v26, %v3579_v29  ;;  %v2896_v29 = vld [vmem:[%s4403_s1 + $0x130] ss:$0 sm:$0xff] }
 0x9be   :  { %v1095_v47 = vpop.permute.xlu0 %1094 }
 0x9bf   :  { %3392 = vmatprep.subr.msk.bf16.mxu1 %vm3927_vm10, %v3390_v30  ;;  %v1089_v45 = vpop.permute.xlu1 %1088  ;;  %v1111_v52 = vsel %vm1110_vm0, %v1108_v49, %v1095_v47  ;;  %v1364_v49 = vld [vmem:[%s4403_s1 + $0x198] sm:$0xff] }
 0x9c0   :  { %3395 = vmatpush3.bf16.msk.msra.mxu1 %vm3927_vm10, %v3390_v30  ;;  %v1109_v55 = vsel %vm308_vm6, %v3963_v7, %v1089_v45  ;;  %v1362_v45 = vld [vmem:[%s4403_s1 + $0x188] sm:$0xff] }
 0x9c1   :  { %v3654_v28 = vpop.eup %3653  ;;  %3405 = vmatprep.subr.bf16.mxu1 %v3404_v15 }
 0x9c2   :  { %v3656_v31 = vpop.eup %3655  ;;  %v995_v33 = vmul.f32 %v3654_v28, %v985_v18  ;;  %v3408_v18 = vpack.c.bf16 %v1253_v17, %v1252_v16  ;;  %v2897_v28 = vld [vmem:[%s4403_s1 + $0x138] ss:$0 sm:$0xff] }
 0x9c3   :  { %v994_v32 = vmul.f32 %v3656_v31, %v984_v19  ;;  %v1097_v46 = vpop.permute.xlu1 %1096 }
 0x9c4   :  { %v1112_v58 = vsel %vm1110_vm0, %v1109_v55, %v1097_v46  ;;  %v1363_v46 = vld [vmem:[%s4403_s1 + $0x190] sm:$0xff]  ;;  %v2898_v55 = vld [vmem:[%s4403_s1 + $0x160] ss:$0 sm:$0xff] }
 0x9c5   :  { %3141 = vmatprep.mubr.msk.f32.mxu1 %vm398_vm11, %v994_v32  ;;  %v3420_v47 = vpack.c.bf16 %v1363_v46, %v1362_v45 }
 0x9c6   :  { %3142 = vmatmul.mubr.msk.f32.vlgmr.msra.gmra.mrb[16].mxu1 %vm398_vm11, %v995_v33 }
 0x9c7   :  { %3407 = vmatpush3.bf16.msra.mxu1 %v3404_v15  ;;  %v2903_v15 = vld [vmem:[%s4403_s1 + $0x1a8] ss:$0 sm:$0xff] }
 0x9c8   :  { %3409 = vmatprep.subr.bf16.mxu1 %v3408_v18 }
 0x9cb   :  { %3411 = vmatpush3.bf16.msra.mxu1 %v3408_v18 }
 0xa99   :  { %v3143_v42 = vpop.f32.mrb[16].mxu1 }
 0xa9a   :  { %1104 = vrot.lane.b32.xlu1 %v3143_v42, %s3751_s14  ;;  %v1075_v43 = vpop.f32.mrb[17].mxu1  ;;  %v1360_v42 = vld [vmem:[%s4403_s1 + $0x178] sm:$0xff] }
 0xa9b   :  { %1102 = vrot.lane.b32.xlu0 %v1075_v43, %s3751_s14  ;;  %v1361_v43 = vld [vmem:[%s4403_s1 + $0x180] sm:$0xff] }
 0xa9c   :  { %v3416_v44 = vpack.c.bf16 %v1361_v43, %v1360_v42 }
 0xb0c   :  { %v1105_v50 = vpop.permute.xlu1 %1104 }
 0xb0d   :  { %v1103_v57 = vpop.permute.xlu0 %1102  ;;  %v1115_v60 = vsel %vm1113_vm1, %v1112_v58, %v1105_v50  ;;  %v1365_v50 = vld [vmem:[%s4403_s1 + $0x1a0] sm:$0xff] }
 0xb0e   :  { %v1114_v59 = vsel %vm1113_vm1, %v1111_v52, %v1103_v57  ;;  %v3424_v52 = vpack.c.bf16 %v1365_v50, %v1364_v49  ;;  %v2904_v49 = vld [vmem:[%s4403_s1 + $0x1b0] ss:$0 sm:$0xff] }
 0xb0f   :  { %3152 = vmatprep.mubr.msk.f32.mxu0 %vm4413_vm5, %v1114_v59  ;;  %vm4422_vm5 = vmmov %vm4421_vm9 }
 0xb10   :  { %3153 = vmatmul.mubr.msk.f32.vlgmr.msra.gmra.mrb[2].mxu0 %vm4414_vm12, %v1115_v60  ;;  %vm4423_vm12 = vmmov %vm4418_vm2 }
 0xb11   :  { %3415 = vmatpush3.bf16.msra.mxu0 %v3412_v41 }
 0xb12   :  { %3417 = vmatprep.subr.bf16.mxu0 %v3416_v44 }
 0xb15   :  { %3419 = vmatpush3.bf16.msra.mxu0 %v3416_v44 }
 0xb16   :  { %3421 = vmatprep.subr.bf16.mxu0 %v3420_v47 }
 0xb19   :  { %3423 = vmatpush3.bf16.msra.mxu0 %v3420_v47 }
 0xb1a   :  { %3425 = vmatprep.subr.bf16.mxu0 %v3424_v52 }
 0xb1d   :  { %3427 = vmatpush3.bf16.msra.mxu0 %v3424_v52 }
 0xbe3   :  { %v3154_v61 = vpop.f32.mrb[2].mxu0 }
 0xbe4   :  { %v1202_v62 = vadd.f32 %v3154_v61, %v3866_v48  ;;  %v1192_v63 = vpop.f32.mrb[3].mxu0 }
 0xbe5   :  { %v1201_v7 = vadd.f32 %v1192_v63, %v3870_v51 }
 0xbe6   :  { %v4061_v0 = vadd.f32 %v2895_v8, %v1202_v62 }
 0xbe7   :  { %v4063_v1 = vadd.f32 %v2895_v8, %v1201_v7 }
 0xbe8   :  { %v1215_v2 = vsel %vm4415_vm13, %v4061_v0, 0.0  ;;  %vm4424_vm13 = vmmov %vm4419_vm3 }
 0xbe9   :  { %1216 = vadd.xlane.f32.xlu1 %v1215_v2  ;;  %v1212_v27 = vsel %vm4416_vm14, %v4063_v1, 0.0  ;;  %vm4425_vm14 = vmmov %vm4418_vm2 }
 0xbea   :  { %1213 = vadd.xlane.f32.xlu0 %v1212_v27 }
 0xc76   :  { %v1217_v25 = vpop.xlane.xlu1 %1216 }
 0xc77   :  { %v1219_v4 = vmul.f32 0.03125, %v1217_v25  ;;  %v1214_v5 = vpop.xlane.xlu0 %1213 }
 0xc78   :  { %v1218_v6 = vmul.f32 0.03125, %v1214_v5 }
 0xc79   :  { %v1221_v48 = vsub.f32 %v4061_v0, %v1219_v4 }
 0xc7a   :  { %v1220_v51 = vsub.f32 %v4063_v1, %v1218_v6 }
 0xc7b   :  { %v1223_v11 = vmul.f32 %v1221_v48, %v1221_v48 }
 0xc7c   :  { %v1222_v9 = vmul.f32 %v1220_v51, %v1220_v51 }
 0xc7d   :  { %v1227_v12 = vsel %vm4418_vm2, %v1223_v11, 0.0  ;;  %vm4427_vm2 = vmmov %vm4419_vm3 }
 0xc7e   :  { %v1224_v10 = vsel %vm4417_vm15, %v1222_v9, 0.0  ;;  %vm4426_vm15 = vmmov %vm4419_vm3 }
 0xc7f   :  { %1225 = vadd.xlane.f32.xlu0 %v1224_v10 }
 0xc83   :  { %1228 = vadd.xlane.f32.xlu0 %v1227_v12 }
 0xd0c   :  { %v1226_v19 = vpop.xlane.xlu0 %1225 }
 0xd0d   :  { %v1230_v20 = vmul.f32 0.03125, %v1226_v19 }
 0xd0f   :  { %v1232_v21 = vadd.f32 1e-06, %v1230_v20 }
 0xd10   :  { %v1229_v22 = vpop.xlane.xlu0 %1228 }
 0xd11   :  { %3657 = vrsqrt.f32 %v1232_v21  ;;  %v1231_v23 = vmul.f32 0.03125, %v1229_v22 }
 0xd13   :  { %v1233_v24 = vadd.f32 1e-06, %v1231_v23 }
 0xd15   :  { %3659 = vrsqrt.f32 %v1233_v24 }
 0xd1b   :  { %v3658_v26 = vpop.eup %3657 }
 0xd1c   :  { %v1236_v30 = vmul.f32 %v3658_v26, %v1220_v51 }
 0xd1e   :  { %v1242_v31 = vmul.f32 %v2896_v29, %v1236_v30 }
 0xd1f   :  { %v3660_v32 = vpop.eup %3659 }
 0xd20   :  { %v1237_v33 = vmul.f32 %v3660_v32, %v1221_v48  ;;  %v1248_v34 = vadd.f32 %v2897_v28, %v1242_v31 }
 0xd22   :  { %v1243_v36 = vmul.f32 %v2896_v29, %v1237_v33  ;;  %3163 = vmatprep.mubr.msk.f32.mxu1 %vm4419_vm3, %v1248_v34  ;;  %v1496_v33 = vld [vmem:[%s4403_s1 + $0x1c0] sm:$0xff]  ;;  %v1497_v34 = vld [vmem:[%s4403_s1 + $0x1c8] sm:$0xff]  ;;  %vm4428_vm3 = vmmov %vm4427_vm2 }
 0xd24   :  { %v1249_v38 = vadd.f32 %v2897_v28, %v1243_v36  ;;  %v3428_v36 = vpack.c.bf16 %v1497_v34, %v1496_v33 }
 0xd26   :  { %3164 = vmatmul.mubr.msk.f32.vlgmr.msra.gmra.mrb[18].mxu1 %vm4420_vm7, %v1249_v38  ;;  %3429 = vmatprep.subr.bf16.mxu1 %v3428_v36  ;;  %v1498_v38 = vld [vmem:[%s4403_s1 + $0x1d0] sm:$0xff] }
 0xd27   :  { %3431 = vmatpush3.bf16.msra.mxu1 %v3428_v36  ;;  %v3432_v40 = vpack.c.bf16 %v1499_v39, %v1498_v38 }
 0xd29   :  { %3433 = vmatprep.subr.bf16.mxu1 %v3432_v40 }
 0xd2b   :  { %3435 = vmatpush3.bf16.msra.mxu1 %v3432_v40 }
 0xdf9   :  { %v3165_v57 = vpop.f32.mrb[18].mxu1 }
 0xdfa   :  { %v1337_v58 = vadd.f32 %v3165_v57, %v2898_v55  ;;  %v1331_v59 = vpop.f32.mrb[19].mxu1  ;;  %v2905_v57 = vld [vmem:[%s4403_s1 + $0x1b8] ss:$0 sm:$0xff] }
 0xdfb   :  { %v1332_v60 = vadd.f32 %v2898_v55, %v1331_v59 }
 0xdfc   :  { %v1341_v61 = vmul.f32 %v1337_v58, %v1337_v58 }
 0xdfd   :  { %v1340_v8 = vmul.f32 %v1332_v60, %v1332_v60 }
 0xdfe   :  { %v1343_v62 = vmul.f32 %v1341_v61, %v1337_v58 }
 0xdff   :  { %v1342_v63 = vmul.f32 %v1340_v8, %v1332_v60  ;;  %v2906_v8 = vld [vmem:[%s4403_s1 + $0x1e0] ss:$0 sm:$0xff] }
 0xe00   :  { %v1345_v7 = vmul.f32 0.044715, %v1343_v62 }
 0xe01   :  { %v1344_v2 = vmul.f32 0.044715, %v1342_v63 }
 0xe02   :  { %v1347_v27 = vadd.f32 %v1345_v7, %v1337_v58 }
 0xe03   :  { %v1346_v25 = vadd.f32 %v1344_v2, %v1332_v60 }
 0xe04   :  { %v1349_v4 = vmul.f32 0.7978846, %v1347_v27 }
 0xe05   :  { %v1348_v5 = vmul.f32 0.7978846, %v1346_v25 }
 0xe06   :  { %3661 = vtanh.f32 %v1349_v4 }
 0xe07   :  { %3663 = vtanh.f32 %v1348_v5 }
 0xe10   :  { %v3662_v6 = vpop.eup %3661 }
 0xe11   :  { %v3664_v48 = vpop.eup %3663  ;;  %v1353_v51 = vadd.f32 1.0, %v3662_v6 }
 0xe12   :  { %v1352_v9 = vadd.f32 1.0, %v3664_v48 }
 0xe13   :  { %v1355_v10 = vmul.f32 0.5, %v1353_v51 }
 0xe14   :  { %v1354_v11 = vmul.f32 0.5, %v1352_v9 }
 0xe15   :  { %v1357_v13 = vmul.f32 %v1355_v10, %v1337_v58 }
 0xe16   :  { %v1356_v12 = vmul.f32 %v1354_v11, %v1332_v60 }
 0xe18   :  { %3182 = vmatprep.mubr.msk.f32.mxu0 %vm4421_vm9, %v1356_v12  ;;  %vm4437_vm9 = vmmov %vm4422_vm5 }
 0xe19   :  { %3183 = vmatmul.mubr.msk.f32.vlgmr.msra.gmra.mrb[4].mxu0 %vm4422_vm5, %v1357_v13 }
 0xeec   :  { %v3184_v14 = vpop.f32.mrb[4].mxu0 }
 0xeed   :  { %v1448_v16 = vadd.f32 %v3184_v14, %v4061_v0  ;;  %v1438_v17 = vpop.f32.mrb[5].mxu0 }
 0xeee   :  { %v1447_v18 = vadd.f32 %v1438_v17, %v4063_v1 }
 0xeef   :  { %v4127_v19 = vadd.f32 %v2903_v15, %v1448_v16 }
 0xef0   :  { %v4129_v20 = vadd.f32 %v2903_v15, %v1447_v18 }
 0xef1   :  { %v1461_v21 = vsel %vm4423_vm12, %v4127_v19, 0.0 }
 0xef2   :  { %1462 = vadd.xlane.f32.xlu1 %v1461_v21  ;;  %v1458_v22 = vsel %vm4424_vm13, %v4129_v20, 0.0 }
 0xef3   :  { %1459 = vadd.xlane.f32.xlu0 %v1458_v22 }
 0xf7f   :  { %v1463_v23 = vpop.xlane.xlu1 %1462 }
 0xf80   :  { %v1465_v24 = vmul.f32 0.03125, %v1463_v23  ;;  %v1460_v26 = vpop.xlane.xlu0 %1459 }
 0xf81   :  { %v1464_v29 = vmul.f32 0.03125, %v1460_v26 }
 0xf82   :  { %v1467_v0 = vsub.f32 %v4127_v19, %v1465_v24 }
 0xf83   :  { %v1466_v1 = vsub.f32 %v4129_v20, %v1464_v29 }
 0xf84   :  { %v1469_v30 = vmul.f32 %v1467_v0, %v1467_v0 }
 0xf85   :  { %v1468_v28 = vmul.f32 %v1466_v1, %v1466_v1 }
 0xf86   :  { %v1473_v31 = vsel %vm4425_vm14, %v1469_v30, 0.0 }
 0xf87   :  { %1474 = vadd.xlane.f32.xlu1 %v1473_v31  ;;  %v1470_v32 = vsel %vm4426_vm15, %v1468_v28, 0.0  ;;  %vm3752_vm15 = vmmov 0  }
 0xf88   :  { %1471 = vadd.xlane.f32.xlu0 %v1470_v32 }
0x1014   :  { %v1475_v41 = vpop.xlane.xlu1 %1474 }
0x1015   :  { %v1477_v42 = vmul.f32 0.03125, %v1475_v41  ;;  %v1472_v43 = vpop.xlane.xlu0 %1471 }
0x1016   :  { %v1476_v44 = vmul.f32 0.03125, %v1472_v43 }
0x1017   :  { %v1479_v45 = vadd.f32 1e-06, %v1477_v42 }
0x1018   :  { %v1478_v46 = vadd.f32 1e-06, %v1476_v44 }
0x1019   :  { %3665 = vrsqrt.f32 %v1479_v45 }
0x101a   :  { %3667 = vrsqrt.f32 %v1478_v46 }
0x1023   :  { %v3666_v47 = vpop.eup %3665 }
0x1024   :  { %v3668_v50 = vpop.eup %3667  ;;  %v1483_v52 = vmul.f32 %v3666_v47, %v1467_v0 }
0x1025   :  { %v1482_v55 = vmul.f32 %v3668_v50, %v1466_v1 }
0x1026   :  { %v1489_v58 = vmul.f32 %v2904_v49, %v1483_v52 }
0x1027   :  { %v1488_v59 = vmul.f32 %v2904_v49, %v1482_v55 }
0x1028   :  { %v1495_v61 = vadd.f32 %v2905_v57, %v1489_v58 }
0x1029   :  { %v1494_v60 = vadd.f32 %v2905_v57, %v1488_v59 }
0x102b   :  { %3193 = vmatprep.mubr.msk.f32.mxu1 %vm4427_vm2, %v1494_v60 }
0x102c   :  { %3194 = vmatmul.mubr.msk.f32.vlgmr.msra.gmra.mrb[20].mxu1 %vm4428_vm3, %v1495_v61 }
0x10ff   :  { %v3195_v62 = vpop.f32.mrb[20].mxu1 }
0x1100   :  { %v4162_v63 = vadd.f32 %v3195_v62, %v2906_v8  ;;  %v1577_v7 = vpop.f32.mrb[21].mxu1 }
0x1101   :  { %v4164_v2 = vadd.f32 %v2906_v8, %v1577_v7 }
0x1103   :  { %3200 = vmatprep.mubr.msk.f32.mxu1 %vm308_vm6, %v4164_v2  ;;  %v4170_v27 = vpack.i.bf16 %v4162_v63, %v4164_v2 }
0x1105   :  { %3587 = vrot.lane.b32.xlu1 %v4170_v27, %s3738_s24  ;;  %3582 = vrot.lane.b32.xlu0 %v4170_v27, %s3737_s23 }
0x1109   :  { %1779 = vrot.lane.b32.xlu1 %v4164_v2, %s3739_s25 }
0x110d   :  { %1781 = vrot.lane.b32.xlu1 %v4162_v63, %s3739_s25 }
0x1177   :  { %v3588_v25 = vpop.permute.xlu1 %3587  ;;  %v3583_v4 = vpop.permute.xlu0 %3582 }
0x1178   :  { %v3590_v5 = vunpack.i.h.bf16 %v3588_v25  ;;  %v3589_v6 = vunpack.i.l.bf16 %v3588_v25  ;;  %v3585_v48 = vunpack.i.h.bf16 %v3583_v4  ;;  %v3584_v51 = vunpack.i.l.bf16 %v3583_v4 }
0x117a   :  { %v3436_v9 = vpack.c.bf16 %v3585_v48, %v3584_v51  ;;  %v3448_v10 = vpack.c.bf16 %v3590_v5, %v3589_v6 }
0x117b   :  { %v1780_v11 = vpop.permute.xlu1 %1779 }
0x117c   :  { %3438 = vmatprep.subr.msk.bf16.mxu1 %vm3923_vm8, %v3436_v9 }
0x117d   :  { %3441 = vmatpush3.bf16.xpose.msk.msra.mxu1 %vm3923_vm8, %v3436_v9 }
0x117e   :  { %3450 = vmatprep.subr.msk.bf16.mxu1 %vm3923_vm8, %v3448_v10 }
0x117f   :  { %v1782_v12 = vpop.permute.xlu1 %1781 }
0x1184   :  { %3201 = vmatmul.mubr.msk.f32.vlgmr.msra.gmra.mrb[22].mxu1 %vm308_vm6, %v4162_v63 }
0x1185   :  { %3453 = vmatpush3.bf16.xpose.msk.msra.mxu1 %vm3923_vm8, %v3448_v10  ;;  %3214 = vmatprep.mubr.msk.f32.mxu1 %vm308_vm6, %v1780_v11 }
0x118c   :  { %3215 = vmatmul.mubr.msk.f32.vlgmr.msra.gmra.mrb[24].mxu1 %vm308_vm6, %v1782_v12 }
0x1257   :  { %v3202_v13 = vpop.f32.mrb[22].mxu1 }
0x1258   :  { %v1677_v14 = vmul.f32 1.442695, %v3202_v13  ;;  %v1666_v15 = vpop.f32.mrb[23].mxu1 }
0x1259   :  { %v1675_v16 = vmul.f32 1.442695, %v1666_v15 }
0x125a   :  { %3669 = vpow2.f32 %v1677_v14 }
0x125b   :  { %3671 = vpow2.f32 %v1675_v16 }
0x125f   :  { %v3216_v17 = vpop.f32.mrb[24].mxu1 }
0x1260   :  { %v1872_v18 = vmul.f32 1.442695, %v3216_v17  ;;  %v1861_v21 = vpop.f32.mrb[25].mxu1 }
0x1261   :  { %v1870_v22 = vmul.f32 1.442695, %v1861_v21 }
0x1262   :  { %3673 = vpow2.f32 %v1872_v18 }
0x1263   :  { %3675 = vpow2.f32 %v1870_v22 }
0x1264   :  { %v3670_v23 = vpop.eup %3669 }
0x1265   :  { %v3672_v24 = vpop.eup %3671  ;;  %v1680_v26 = vmul.f32 %v3670_v23, %v3944_v54 }
0x1266   :  { %v1679_v29 = vmul.f32 %v3672_v24, %v3947_v56 }
0x1267   :  { %v1684_v0 = vsel %vm402_vm4, %v1680_v26, 0.0 }
0x1268   :  { %1685 = vadd.xlane.f32.xlu1 %v1684_v0  ;;  %v1681_v1 = vsel %vm398_vm11, %v1679_v29, 0.0 }
0x1269   :  { %1682 = vadd.xlane.f32.xlu0 %v1681_v1 }
0x126c   :  { %v3674_v30 = vpop.eup %3673 }
0x126d   :  { %v3676_v28 = vpop.eup %3675  ;;  %v1875_v31 = vmul.f32 %v3674_v30, %v3944_v54 }
0x126e   :  { %v1874_v33 = vmul.f32 %v3676_v28, %v3947_v56 }
0x126f   :  { %v1879_v32 = vsel %vm402_vm4, %v1875_v31, 0.0 }
0x1270   :  { %1880 = vadd.xlane.f32.xlu0 %v1879_v32  ;;  %v1876_v34 = vsel %vm398_vm11, %v1874_v33, 0.0 }
0x1274   :  { %1877 = vadd.xlane.f32.xlu0 %v1876_v34 }
0x1279   :  { %3597 = vrot.lane.b32.xlu1 %v4170_v27, %s3744_s28 }
0x127d   :  { %3602 = vrot.lane.b32.xlu1 %v4170_v27, %s3742_s26 }
0x1281   :  { %1974 = vrot.lane.b32.xlu1 %v4164_v2, %s3743_s27 }
0x1285   :  { %3612 = vrot.lane.b32.xlu1 %v4170_v27, %s3745_s29 }
0x128a   :  { %3592 = vrot.lane.b32.xlu0 %v4170_v27, %s3736_s22  ;;  %s3711_s22 = scalar_lea.vmem %s2850_s17, 32 }
0x128b   :  { %p3712_p0 = scmp.ne.s32.totalorder %s2850_s17, %s3711_s22  ;;  %p3717_p2 = scmp.lt.s32.totalorder %s3711_s22, %s3711_s22 }
0x128d   :  { %p3718_p3 = por %p3717_p2, %p3716_p1 }
0x128e   :  { %1976 = vrot.lane.b32.xlu0 %v4162_v63, %s3743_s27 }
0x128f   :  { %p3719_p4 = pnand %p3718_p3, %p3712_p0 }
0x12f5   :  { %v1686_v38 = vpop.xlane.xlu1 %1685 }
0x12f6   :  { %v1683_v36 = vpop.xlane.xlu0 %1682 }
0x12f7   :  { %3677 = vrcp.f32 %v1683_v36 }
0x12f8   :  { %3679 = vrcp.f32 %v1686_v38 }
0x12f9   :  { %v3598_v41 = vpop.permute.xlu1 %3597 }
0x12fa   :  { %v3600_v45 = vunpack.i.h.bf16 %v3598_v41  ;;  %v3599_v46 = vunpack.i.l.bf16 %v3598_v41 }
0x12fc   :  { %v3454_v57 = vpack.c.bf16 %v3600_v45, %v3599_v46 }
0x12fd   :  { %v1881_v39 = vpop.xlane.xlu0 %1880  ;;  %v3603_v50 = vpop.permute.xlu1 %3602 }
0x12fe   :  { %v3605_v58 = vunpack.i.h.bf16 %v3603_v50  ;;  %v3604_v59 = vunpack.i.l.bf16 %v3603_v50 }
0x1300   :  { %v3460_v7 = vpack.c.bf16 %v3605_v58, %v3604_v59 }
0x1301   :  { %v3678_v40 = vpop.eup %3677  ;;  %v1878_v42 = vpop.xlane.xlu0 %1877 }
0x1302   :  { %3681 = vrcp.f32 %v1878_v42  ;;  %v1689_v43 = vmul.f32 %v3678_v40, %v1679_v29  ;;  %v3680_v55 = vpop.eup %3679  ;;  %v1975_v4 = vpop.permute.xlu1 %1974 }
0x1303   :  { %3683 = vrcp.f32 %v1881_v39  ;;  %v1690_v61 = vmul.f32 %v3680_v55, %v1680_v26 }
0x1304   :  { %3207 = vmatprep.mubr.msk.f32.mxu0 %vm398_vm11, %v1689_v43 }
0x1305   :  { %v3593_v44 = vpop.permute.xlu0 %3592 }
0x1306   :  { %v3595_v47 = vunpack.i.h.bf16 %v3593_v44  ;;  %v3594_v49 = vunpack.i.l.bf16 %v3593_v44  ;;  %v3613_v22 = vpop.permute.xlu1 %3612 }
0x1307   :  { %v3615_v29 = vunpack.i.h.bf16 %v3613_v22  ;;  %v3614_v0 = vunpack.i.l.bf16 %v3613_v22 }
0x1308   :  { %v3442_v52 = vpack.c.bf16 %v3595_v47, %v3594_v49 }
0x1309   :  { %v1977_v5 = vpop.permute.xlu0 %1976 }
0x130a   :  { %3444 = vmatprep.subr.msk.bf16.mxu0 %vm3927_vm10, %v3442_v52 }
0x130b   :  { %3447 = vmatpush3.bf16.msk.msra.mxu0 %vm3927_vm10, %v3442_v52 }
0x130c   :  { %v3682_v60 = vpop.eup %3681  ;;  %3456 = vmatprep.subr.msk.bf16.mxu0 %vm3927_vm10, %v3454_v57 }
0x130d   :  { %v3684_v8 = vpop.eup %3683  ;;  %v1884_v62 = vmul.f32 %v3682_v60, %v1874_v33 }
0x130e   :  { %3208 = vmatmul.mubr.msk.f32.vlgmr.msra.gmra.mrb[6].mxu0 %vm398_vm11, %v1690_v61  ;;  %v1885_v25 = vmul.f32 %v3684_v8, %v1875_v31  ;;  %v3472_v31 = vpack.c.bf16 %v3615_v29, %v3614_v0  ;;  %v2394_v61 = vld [vmem:[%s4403_s1 + $0x1e8] sm:$0xff]  ;;  %v2395_v8 = vld [vmem:[%s4403_s1 + $0x1f0] sm:$0xff] }
0x130f   :  { %3459 = vmatpush3.bf16.msk.msra.mxu0 %vm3927_vm10, %v3454_v57  ;;  %3221 = vmatprep.mubr.msk.f32.mxu0 %vm398_vm11, %v1884_v62  ;;  %v3484_v62 = vpack.c.bf16 %v2395_v8, %v2394_v61  ;;  %v2637_v61 = vld [vmem:[%s4403_s1 + $0x250] sm:$0xff] }
0x1310   :  { %3462 = vmatprep.subr.msk.bf16.mxu0 %vm3923_vm8, %v3460_v7 }
0x1312   :  { %3222 = vmatmul.mubr.msk.f32.vlgmr.msra.gmra.mrb[8].mxu0 %vm398_vm11, %v1885_v25 }
0x1313   :  { %3228 = vmatprep.mubr.msk.f32.mxu0 %vm308_vm6, %v1975_v4 }
0x1318   :  { %3465 = vmatpush3.bf16.xpose.msk.msra.mxu0 %vm3923_vm8, %v3460_v7  ;;  %v2397_v7 = vld [vmem:[%s4403_s1 + $0x200] sm:$0xff] }
0x1319   :  { %v3488_v25 = vpack.c.bf16 %v2397_v7, %v2396_v37  ;;  %v2638_v37 = vld [vmem:[%s4403_s1 + $0x258] sm:$0xff] }
0x131f   :  { %3229 = vmatmul.mubr.msk.f32.vlgmr.msra.gmra.mrb[10].mxu0 %vm308_vm6, %v1977_v5 }
0x13e1   :  { %v4230_v6 = vpop.f32.mrb[6].mxu0 }
0x13e2   :  { %v4232_v48 = vpop.f32.mrb[7].mxu0 }
0x13e5   :  { %v3223_v51 = vpop.f32.mrb[8].mxu0 }
0x13e6   :  { %v1965_v9 = vpop.f32.mrb[9].mxu0 }
0x13f2   :  { %v3230_v10 = vpop.f32.mrb[10].mxu0 }
0x13f3   :  { %v2067_v11 = vmul.f32 1.442695, %v3230_v10  ;;  %v2056_v12 = vpop.f32.mrb[11].mxu0 }
0x13f4   :  { %v2065_v13 = vmul.f32 1.442695, %v2056_v12 }
0x13f5   :  { %3685 = vpow2.f32 %v2067_v11 }
0x13f6   :  { %3687 = vpow2.f32 %v2065_v13 }
0x13ff   :  { %v3686_v14 = vpop.eup %3685 }
0x1400   :  { %v3688_v15 = vpop.eup %3687  ;;  %v2070_v16 = vmul.f32 %v3686_v14, %v3944_v54 }
0x1401   :  { %v2069_v17 = vmul.f32 %v3688_v15, %v3947_v56 }
0x1402   :  { %v2074_v18 = vsel %vm402_vm4, %v2070_v16, 0.0 }
0x1403   :  { %2075 = vadd.xlane.f32.xlu0 %v2074_v18  ;;  %v2071_v21 = vsel %vm398_vm11, %v2069_v17, 0.0 }
0x1404   :  { %2072 = vadd.xlane.f32.xlu1 %v2071_v21 }
0x1415   :  { %2169 = vrot.lane.b32.xlu1 %v4164_v2, %s3746_s30 }
0x1419   :  { %3607 = vrot.lane.b32.xlu0 %v4170_v27, %s3747_s3 }
0x141d   :  { %2171 = vrot.lane.b32.xlu0 %v4162_v63, %s3746_s30 }
0x1490   :  { %v2076_v23 = vpop.xlane.xlu0 %2075 }
0x1491   :  { %3689 = vrcp.f32 %v2076_v23  ;;  %v2073_v24 = vpop.xlane.xlu1 %2072 }
0x1492   :  { %3691 = vrcp.f32 %v2073_v24 }
0x1494   :  { %v3608_v26 = vpop.permute.xlu0 %3607 }
0x1495   :  { %v3610_v1 = vunpack.i.h.bf16 %v3608_v26  ;;  %v3609_v30 = vunpack.i.l.bf16 %v3608_v26  ;;  %v2170_v34 = vpop.permute.xlu1 %2169 }
0x1497   :  { %v3466_v28 = vpack.c.bf16 %v3610_v1, %v3609_v30 }
0x1498   :  { %v2172_v36 = vpop.permute.xlu0 %2171 }
0x1499   :  { %3468 = vmatprep.subr.msk.bf16.mxu1 %vm3927_vm10, %v3466_v28 }
0x149a   :  { %3471 = vmatpush3.bf16.msk.msra.mxu1 %vm3927_vm10, %v3466_v28 }
0x149b   :  { %v3690_v2 = vpop.eup %3689  ;;  %3474 = vmatprep.subr.msk.bf16.mxu1 %vm3923_vm8, %v3472_v31 }
0x149c   :  { %v3692_v63 = vpop.eup %3691  ;;  %v2080_v33 = vmul.f32 %v3690_v2, %v2070_v16 }
0x149d   :  { %v2079_v32 = vmul.f32 %v3692_v63, %v2069_v17 }
0x149f   :  { %3235 = vmatprep.mubr.msk.f32.mxu1 %vm398_vm11, %v2079_v32 }
0x14a0   :  { %3236 = vmatmul.mubr.msk.f32.vlgmr.msra.gmra.mrb[26].mxu1 %vm398_vm11, %v2080_v33 }
0x14a1   :  { %3242 = vmatprep.mubr.msk.f32.mxu1 %vm308_vm6, %v2170_v34 }
0x14a3   :  { %3477 = vmatpush3.bf16.xpose.msk.msra.mxu1 %vm3923_vm8, %v3472_v31  ;;  %vm4430_vm8 = vmmov %vm4427_vm2 }
0x14aa   :  { %3243 = vmatmul.mubr.msk.f32.vlgmr.msra.gmra.mrb[28].mxu1 %vm308_vm6, %v2172_v36  ;;  %v2528_v36 = vld [vmem:[%s4403_s1 + $0x220] sm:$0xff] }
0x1573   :  { %v3237_v38 = vpop.f32.mrb[26].mxu1 }
0x1574   :  { %v2160_v39 = vpop.f32.mrb[27].mxu1 }
0x157d   :  { %v3244_v40 = vpop.f32.mrb[28].mxu1 }
0x157e   :  { %v2262_v41 = vmul.f32 1.442695, %v3244_v40  ;;  %v2251_v42 = vpop.f32.mrb[29].mxu1  ;;  %v2530_v40 = vld [vmem:[%s4403_s1 + $0x230] sm:$0xff] }
0x157f   :  { %v2260_v43 = vmul.f32 1.442695, %v2251_v42 }
0x1580   :  { %3693 = vpow2.f32 %v2262_v41  ;;  %v2531_v41 = vld [vmem:[%s4403_s1 + $0x238] sm:$0xff] }
0x1581   :  { %3695 = vpow2.f32 %v2260_v43  ;;  %v3496_v42 = vpack.c.bf16 %v2531_v41, %v2530_v40 }
0x158a   :  { %v3694_v44 = vpop.eup %3693 }
0x158b   :  { %v3696_v45 = vpop.eup %3695  ;;  %v2265_v46 = vmul.f32 %v3694_v44, %v3944_v54 }
0x158c   :  { %v2264_v47 = vmul.f32 %v3696_v45, %v3947_v56 }
0x158d   :  { %v2269_v35 = vsel %vm402_vm4, %v2265_v46, 0.0  ;;  %vm4429_vm4 = vmmov %vm4427_vm2 }
0x158e   :  { %2270 = vadd.xlane.f32.xlu0 %v2269_v35  ;;  %v2266_v49 = vsel %vm398_vm11, %v2264_v47, 0.0 }
0x158f   :  { %2267 = vadd.xlane.f32.xlu1 %v2266_v49 }
0x15a0   :  { %2366 = vrot.lane.b32.xlu1 %v1965_v9, %s3748_s4 }
0x15a4   :  { %3617 = vrot.lane.b32.xlu0 %v4170_v27, %s3749_s5  ;;  %2368 = vrot.lane.b32.xlu1 %v3223_v51, %s3748_s4 }
0x15a8   :  { %2374 = vrot.lane.b32.xlu0 %v2160_v39, %s3750_s6  ;;  %2376 = vrot.lane.b32.xlu1 %v3237_v38, %s3750_s6  ;;  %v2529_v38 = vld [vmem:[%s4403_s1 + $0x228] sm:$0xff] }
0x15a9   :  { %v3492_v39 = vpack.c.bf16 %v2529_v38, %v2528_v36 }
0x15ab   :  { %3493 = vmatprep.subr.bf16.mxu1 %v3492_v39 }
0x15ac   :  { %3495 = vmatpush3.bf16.msra.mxu1 %v3492_v39 }
0x15ad   :  { %3497 = vmatprep.subr.bf16.mxu1 %v3496_v42 }
0x15b0   :  { %3499 = vmatpush3.bf16.msra.mxu1 %v3496_v42 }
0x15b1   :  { %3516 = vmatprep.subr.bf16.mxu1 %v3735_v3 }
0x161b   :  { %v2271_v54 = vpop.xlane.xlu0 %2270 }
0x161c   :  { %3697 = vrcp.f32 %v2271_v54  ;;  %v2268_v56 = vpop.xlane.xlu1 %2267  ;;  %v2940_v54 = vld [vmem:[%s4403_s1 + $0x210] ss:$0 sm:$0xff] }
0x161d   :  { %3699 = vrcp.f32 %v2268_v56 }
0x161f   :  { %v3618_v50 = vpop.permute.xlu0 %3617 }
0x1620   :  { %v3620_v52 = vunpack.i.h.bf16 %v3618_v50  ;;  %v3619_v55 = vunpack.i.l.bf16 %v3618_v50  ;;  %v2367_v51 = vpop.permute.xlu1 %2366  ;;  %v2941_v50 = vld [vmem:[%s4403_s1 + $0x218] ss:$0 sm:$0xff] }
0x1621   :  { %v2388_v12 = vsel %vm308_vm6, %v4232_v48, %v2367_v51  ;;  %v2939_v48 = vld [vmem:[%s4403_s1 + $0x208] ss:$0 sm:$0xff]  ;;  %v2642_v51 = vld [vmem:[%s4403_s1 + $0x278] sm:$0xff] }
0x1622   :  { %v3478_v57 = vpack.c.bf16 %v3620_v52, %v3619_v55 }
0x1623   :  { %v2375_v11 = vpop.permute.xlu0 %2374 }
0x1624   :  { %3480 = vmatprep.subr.msk.bf16.mxu0 %vm3927_vm10, %v3478_v57  ;;  %v2369_v9 = vpop.permute.xlu1 %2368  ;;  %v2390_v14 = vsel %vm1110_vm0, %v2388_v12, %v2375_v11  ;;  %v2942_v11 = vld [vmem:[%s4403_s1 + $0x240] ss:$0 sm:$0xff] }
0x1625   :  { %3483 = vmatpush3.bf16.msk.msra.mxu0 %vm3927_vm10, %v3478_v57  ;;  %v2389_v15 = vsel %vm308_vm6, %v4230_v6, %v2369_v9  ;;  %vm4431_vm6 = vmmov %vm4423_vm12  ;;  %v2643_v9 = vld [vmem:[%s4403_s1 + $0x280] sm:$0xff]  ;;  %vm4438_vm12 = vcmask 1040384  }
0x1626   :  { %v3698_v27 = vpop.eup %3697  ;;  %3485 = vmatprep.subr.bf16.mxu0 %v3484_v62  ;;  %vm4432_vm10 = vmmov %vm4427_vm2 }
0x1627   :  { %v3700_v58 = vpop.eup %3699  ;;  %v2275_v60 = vmul.f32 %v3698_v27, %v2265_v46 }
0x1628   :  { %v2274_v59 = vmul.f32 %v3700_v58, %v2264_v47  ;;  %v2377_v10 = vpop.permute.xlu1 %2376 }
0x1629   :  { %v2391_v17 = vsel %vm1110_vm0, %v2389_v15, %v2377_v10  ;;  %vm4434_vm0 = vmmov %vm4431_vm6  ;;  %v3512_v10 = vpack.c.bf16 %v2643_v9, %v2642_v51 }
0x162a   :  { %3249 = vmatprep.mubr.msk.f32.mxu0 %vm398_vm11, %v2274_v59  ;;  %vm4439_vm13 = vmmov %vm4434_vm0 }
0x162b   :  { %3250 = vmatmul.mubr.msk.f32.vlgmr.msra.gmra.mrb[12].mxu0 %vm398_vm11, %v2275_v60  ;;  %vm4433_vm11 = vmmov %vm4427_vm2  ;;  %v2636_v60 = vld [vmem:[%s4403_s1 + $0x248] sm:$0xff] }
0x162c   :  { %3487 = vmatpush3.bf16.msra.mxu0 %v3484_v62  ;;  %v3500_v8 = vpack.c.bf16 %v2637_v61, %v2636_v60  ;;  %v2639_v62 = vld [vmem:[%s4403_s1 + $0x260] sm:$0xff]  ;;  %vm4440_vm14 = vmmov %vm4434_vm0 }
0x162d   :  { %3489 = vmatprep.subr.bf16.mxu0 %v3488_v25  ;;  %v3504_v7 = vpack.c.bf16 %v2639_v62, %v2638_v37 }
0x1630   :  { %3491 = vmatpush3.bf16.msra.mxu0 %v3488_v25  ;;  %v2640_v25 = vld [vmem:[%s4403_s1 + $0x268] sm:$0xff] }
0x1631   :  { %3501 = vmatprep.subr.bf16.mxu0 %v3500_v8 }
0x16fe   :  { %v3251_v4 = vpop.f32.mrb[12].mxu0 }
0x16ff   :  { %2384 = vrot.lane.b32.xlu1 %v3251_v4, %s3751_s14  ;;  %v2355_v5 = vpop.f32.mrb[13].mxu0  ;;  %v2641_v4 = vld [vmem:[%s4403_s1 + $0x270] sm:$0xff] }
0x1700   :  { %2382 = vrot.lane.b32.xlu0 %v2355_v5, %s3751_s14  ;;  %v3508_v5 = vpack.c.bf16 %v2641_v4, %v2640_v25 }
0x1771   :  { %v2385_v13 = vpop.permute.xlu1 %2384 }
0x1772   :  { %v2383_v16 = vpop.permute.xlu0 %2382  ;;  %v2393_v21 = vsel %vm1113_vm1, %v2391_v17, %v2385_v13 }
0x1773   :  { %v2392_v18 = vsel %vm1113_vm1, %v2390_v14, %v2383_v16  ;;  %vm4435_vm1 = vmmov %vm4427_vm2 }
0x1774   :  { %3260 = vmatprep.mubr.msk.f32.mxu0 %vm4429_vm4, %v2392_v18  ;;  %vm4436_vm7 = vmmov %vm4435_vm1 }
0x1775   :  { %3261 = vmatmul.mubr.msk.f32.vlgmr.msra.gmra.mrb[14].mxu0 %vm4430_vm8, %v2393_v21  ;;  %vm4441_vm2 = vmmov %vm4435_vm1 }
0x1776   :  { %3503 = vmatpush3.bf16.msra.mxu0 %v3500_v8 }
0x1777   :  { %3505 = vmatprep.subr.bf16.mxu0 %v3504_v7 }
0x177a   :  { %3507 = vmatpush3.bf16.msra.mxu0 %v3504_v7 }
0x177b   :  { %3509 = vmatprep.subr.bf16.mxu0 %v3508_v5 }
0x177e   :  { %3511 = vmatpush3.bf16.msra.mxu0 %v3508_v5 }
0x177f   :  { %3513 = vmatprep.subr.bf16.mxu0 %v3512_v10 }
0x1782   :  { %3515 = vmatpush3.bf16.msra.mxu0 %v3512_v10 }
0x1848   :  { %v3262_v22 = vpop.f32.mrb[14].mxu0 }
0x1849   :  { %v2480_v23 = vadd.f32 %v3262_v22, %v4127_v19  ;;  %v2470_v24 = vpop.f32.mrb[15].mxu0 }
0x184a   :  { %v2479_v6 = vadd.f32 %v2470_v24, %v4129_v20 }
0x184b   :  { %v2487_v26 = vadd.f32 %v2939_v48, %v2480_v23 }
0x184c   :  { %v4301_v29 = vadd.f32 %v2939_v48, %v2479_v6 }
0x184d   :  { %v2493_v0 = vsel %vm4431_vm6, %v2487_v26, 0.0 }
0x184e   :  { %2494 = vadd.xlane.f32.xlu1 %v2493_v0  ;;  %v2490_v1 = vsel %vm4432_vm10, %v4301_v29, 0.0 }
0x184f   :  { %2491 = vadd.xlane.f32.xlu0 %v2490_v1 }
0x18db   :  { %v2495_v30 = vpop.xlane.xlu1 %2494 }
0x18dc   :  { %v2497_v28 = vmul.f32 0.03125, %v2495_v30  ;;  %v2492_v31 = vpop.xlane.xlu0 %2491 }
0x18dd   :  { %v2496_v2 = vmul.f32 0.03125, %v2492_v31 }
0x18de   :  { %v2499_v63 = vsub.f32 %v2487_v26, %v2497_v28 }
0x18df   :  { %v2498_v19 = vsub.f32 %v4301_v29, %v2496_v2 }
0x18e0   :  { %v2501_v33 = vmul.f32 %v2499_v63, %v2499_v63 }
0x18e1   :  { %v2500_v32 = vmul.f32 %v2498_v19, %v2498_v19 }
0x18e2   :  { %v2505_v34 = vsel %vm4434_vm0, %v2501_v33, 0.0  ;;  %v2947_v33 = vld [vmem:[%s4403_s1 + $0x288] ss:$0 sm:$0xff] }
0x18e3   :  { %v2502_v20 = vsel %vm4433_vm11, %v2500_v32, 0.0 }
0x18e4   :  { %2503 = vadd.xlane.f32.xlu0 %v2502_v20 }
0x18e8   :  { %2506 = vadd.xlane.f32.xlu0 %v2505_v34 }
0x1971   :  { %v2504_v43 = vpop.xlane.xlu0 %2503 }
0x1972   :  { %v2508_v44 = vmul.f32 0.03125, %v2504_v43 }
0x1974   :  { %v2510_v45 = vadd.f32 1e-06, %v2508_v44 }
0x1975   :  { %v2507_v46 = vpop.xlane.xlu0 %2506 }
0x1976   :  { %3701 = vrsqrt.f32 %v2510_v45  ;;  %v2509_v47 = vmul.f32 0.03125, %v2507_v46  ;;  %v2760_v46 = vld [vmem:[%s4403_s1 + $0x2a0] sm:$0xff] }
0x1978   :  { %v2511_v35 = vadd.f32 1e-06, %v2509_v47 }
0x197a   :  { %3703 = vrsqrt.f32 %v2511_v35  ;;  %v2762_v35 = vld [vmem:[%s4403_s1 + $0x2b0] sm:$0xff] }
0x1980   :  { %v3702_v49 = vpop.eup %3701 }
0x1981   :  { %v2514_v56 = vmul.f32 %v3702_v49, %v2498_v19  ;;  %v2763_v49 = vld [vmem:[%s4403_s1 + $0x2b8] sm:$0xff] }
0x1983   :  { %v2520_v52 = vmul.f32 %v2940_v54, %v2514_v56 }
0x1984   :  { %v3704_v55 = vpop.eup %3703 }
0x1985   :  { %v2515_v57 = vmul.f32 %v3704_v55, %v2499_v63  ;;  %v2526_v27 = vadd.f32 %v2941_v50, %v2520_v52 }
0x1987   :  { %v2521_v58 = vmul.f32 %v2940_v54, %v2515_v57  ;;  %3271 = vmatprep.mubr.msk.f32.mxu1 %vm4435_vm1, %v2526_v27  ;;  %v3520_v54 = vpack.c.bf16 %v2763_v49, %v2762_v35  ;;  %v2949_v27 = vld [vmem:[%s4403_s1 + $0x298] ss:$0 sm:$0xff] }
0x1989   :  { %v2527_v59 = vadd.f32 %v2941_v50, %v2521_v58 }
0x198b   :  { %3272 = vmatmul.mubr.msk.f32.vlgmr.msra.gmra.mrb[30].mxu1 %vm4436_vm7, %v2527_v59 }
0x198c   :  { %3301 = vmatprep.mubr.msk.f32.mxu1 %vm3752_vm15, %v3741_v53  ;;  %v2950_v53 = vld [vmem:[%s4403_s1 + $0x2c0] ss:$0 sm:$0xff] }
0x1a5e   :  { %v3273_v12 = vpop.f32.mrb[30].mxu1 }
0x1a5f   :  { %v2615_v13 = vadd.f32 %v3273_v12, %v2942_v11  ;;  %v2609_v14 = vpop.f32.mrb[31].mxu1 }
0x1a60   :  { %v2610_v15 = vadd.f32 %v2942_v11, %v2609_v14 }
0x1a61   :  { %v2619_v16 = vmul.f32 %v2615_v13, %v2615_v13 }
0x1a62   :  { %v2618_v17 = vmul.f32 %v2610_v15, %v2610_v15 }
0x1a63   :  { %v2621_v18 = vmul.f32 %v2619_v16, %v2615_v13 }
0x1a64   :  { %v2620_v21 = vmul.f32 %v2618_v17, %v2610_v15 }
0x1a65   :  { %v2623_v22 = vmul.f32 0.044715, %v2621_v18 }
0x1a66   :  { %v2622_v48 = vmul.f32 0.044715, %v2620_v21 }
0x1a67   :  { %v2625_v23 = vadd.f32 %v2623_v22, %v2615_v13 }
0x1a68   :  { %v2624_v24 = vadd.f32 %v2622_v48, %v2610_v15 }
0x1a69   :  { %v2627_v6 = vmul.f32 0.7978846, %v2625_v23 }
0x1a6a   :  { %v2626_v26 = vmul.f32 0.7978846, %v2624_v24 }
0x1a6b   :  { %3705 = vtanh.f32 %v2627_v6 }
0x1a6c   :  { %3707 = vtanh.f32 %v2626_v26 }
0x1a75   :  { %v3706_v0 = vpop.eup %3705 }
0x1a76   :  { %v3708_v1 = vpop.eup %3707  ;;  %v2631_v30 = vadd.f32 1.0, %v3706_v0 }
0x1a77   :  { %v2630_v28 = vadd.f32 1.0, %v3708_v1 }
0x1a78   :  { %v2633_v31 = vmul.f32 0.5, %v2631_v30 }
0x1a79   :  { %v2632_v2 = vmul.f32 0.5, %v2630_v28 }
0x1a7a   :  { %v2635_v19 = vmul.f32 %v2633_v31, %v2615_v13 }
0x1a7b   :  { %v2634_v63 = vmul.f32 %v2632_v2, %v2610_v15 }
0x1a7d   :  { %3290 = vmatprep.mubr.msk.f32.mxu0 %vm4437_vm9, %v2634_v63 }
0x1a7e   :  { %3291 = vmatmul.mubr.msk.f32.vlgmr.msra.gmra.mrb[16].mxu0 %vm4422_vm5, %v2635_v19 }
0x1b51   :  { %v3292_v32 = vpop.f32.mrb[16].mxu0 }
0x1b52   :  { %v2716_v20 = vpop.f32.mrb[17].mxu0 }
0x1b53   :  { %v2724_v34 = vadd.f32 %v2716_v20, %v4301_v29  ;;  %v2761_v29 = vld [vmem:[%s4403_s1 + $0x2a8] sm:$0xff] }
0x1b54   :  { %v3517_v47 = vpack.c.bf16 %v2761_v29, %v2760_v46 }
0x1b55   :  { %v2730_v36 = vadd.f32 %v2947_v33, %v2724_v34 }
0x1b56   :  { %3518 = vmatpush3.bf16.msra.mxu1 %v3517_v47 }
0x1b57   :  { %v2732_v38 = vrot.slane %v2730_v36, 4  ;;  %3519 = vmatprep.subr.bf16.mxu1 %v3735_v3  ;;  %v2948_v3 = vld [vmem:[%s4403_s1 + $0x290] ss:$0 sm:$0xff] }
0x1b59   :  { %v2734_v39 = vsel %vm4438_vm12, %v2730_v36, %v2732_v38 }
0x1b5a   :  { %v2737_v40 = vsel %vm4439_vm13, %v2734_v39, 0.0  ;;  %3521 = vmatpush3.bf16.msra.mxu1 %v3520_v54 }
0x1b5b   :  { %2738 = vadd.xlane.f32.xlu0 %v2737_v40 }
0x1be8   :  { %v2739_v41 = vpop.xlane.xlu0 %2738 }
0x1be9   :  { %v2740_v42 = vmul.f32 0.03125, %v2739_v41 }
0x1beb   :  { %v2741_v43 = vsub.f32 %v2734_v39, %v2740_v42 }
0x1bed   :  { %v2742_v44 = vmul.f32 %v2741_v43, %v2741_v43 }
0x1bef   :  { %v2743_v45 = vsel %vm4440_vm14, %v2742_v44, 0.0 }
0x1bf0   :  { %2744 = vadd.xlane.f32.xlu1 %v2743_v45 }
0x1c7d   :  { %v2745_v56 = vpop.xlane.xlu1 %2744 }
0x1c7e   :  { %v2746_v50 = vmul.f32 0.03125, %v2745_v56 }
0x1c80   :  { %v2747_v52 = vadd.f32 1e-06, %v2746_v50 }
0x1c82   :  { %3709 = vrsqrt.f32 %v2747_v52 }
0x1c8c   :  { %v3710_v55 = vpop.eup %3709 }
0x1c8d   :  { %v2749_v57 = vmul.f32 %v3710_v55, %v2741_v43 }
0x1c8f   :  { %v2754_v58 = vmul.f32 %v2948_v3, %v2749_v57 }
0x1c91   :  { %v2759_v59 = vadd.f32 %v2949_v27, %v2754_v58 }
0x1c93   :  { %3302 = vmatmul.mubr.msk.f32.vlgmr.msra.gmra.mrb[32].mxu1 %vm4441_vm2, %v2759_v59 }
0x1d66   :  { %v2838_v60 = vpop.f32.mrb[32].mxu1 }
0x1d67   :  { %v2839_v61 = vadd.f32 %v2950_v53, %v2838_v60  ;;  %v3303_v8 = vpop.f32.mrb[33].mxu1 }
0x1d69   :  { %2842 = vst [vmem:[#allocation2] sm:$0x3] %v2839_v61 }
0x1d6a   :  { %3722 = shalt.err (!%p3719_p4)
}
0x1d6b   :  { %s3723_s25 = scalar_lea.hbm %s4404_s2, 32 }
0x1d6c   :  { %p3724_p5 = scmp.ne.s32.totalorder %s4404_s2, %s3723_s25  ;;  %p3727_p6 = scmp.lt.u32.totalorder %s3723_s25, %s4404_s2 }
0x1d6e   :  { %p3729_p7 = pnand %p3727_p6, %p3724_p5 }
0x1d70   :  { %3732 = shalt.err (!%p3729_p7)
}
0x1d71   :  { %2852 = dma.vmem_to_hbm [thread:$0]  %s2850_s17, 32, %s4404_s2, [#allocation3]  }
0x1d72   :  { %3733 = dma.done.wait [#allocation3], 32  }
0x1d73   :  { %3734 = vsyncadd [#allocation3], 4294967264 }
0x1d74   :  { %2856 = vsyncpa [#allocation3], 1 }

</bundles_post_ra>
